<compile_context>
chip_gen: v6e
topology: v6e:2x2x1
jax: 0.10.0
libtpu: 0.0.40
codegen_flags: <defaults>
</compile_context>

<pallas_src>
import functools

import jax
import jax.numpy as jnp
from jax import lax
from jax.experimental import pallas as pl
from jax.experimental.pallas import tpu as pltpu

BN_EPS = 1e-5


def dalstm_kernel(x_ref,
                  w1_ref, u1_ref, b1_ref,
                  w2_ref, u2_ref, shift2_ref,
                  bn_s_ref,
                  lin_w_ref, lin_b_ref,
                  out_ref,
                  seq_ref, pre_ref,
                  *, n_layers, T, H, B):
    """One batch tile of the full DALSTM forward.

    x_ref:      (T, B, F)   time-major input tile (VMEM, f32)
    w1/w2:      (F|H, 4H)   input-projection weights, bf16, gate order (i, f, o, g)
    u1/u2:      (H, 4H)     recurrent weights, bf16, gate order (i, f, o, g)
    b1_ref:     (1, 4H)     merged b_ih + b_hh of lstm1, f32
    shift2_ref: (T, 1, 4H)  folded per-timestep shift for the lstm2 projection:
                            bn_shift[t] * colsum(W2) + (b_ih2 + b_hh2), f32
    bn_s_ref:   (T,)        folded BatchNorm scale per timestep (SMEM scalars)
    lin_w_ref:  (8, H)      final-linear weight row (BN scale at t=T-1 folded in),
                            replicated over 8 sublanes for an aligned matmul M
    lin_b_ref:  (1,)        final-linear bias (BN shift at t=T-1 folded in), SMEM
    out_ref:    (8, B)      lane-dense output slab (all 8 rows identical; row 0 used)
    seq_ref:    (T, B, H)   RAW hidden sequence of the current pass (VMEM scratch)
    pre_ref:    (T, B, 4H)  batched input projections for the current pass (scratch)
    """
    G = 4 * H
    H3 = 3 * H

    def recurrent_pass(u_hh_bf16, h, c, store_seq):
        # Statically unrolled: T is small and compile-time known; all ref indices are
        # static.  With BN folded out, the serial critical path per step is exactly one
        # small bf16 matmul + 3 EUP launches (sigmoid(i|f|o), tanh(g), tanh(c)) + FMAs.
        for t in range(T):
            gates = pre_ref[t] + jnp.dot(h.astype(jnp.bfloat16), u_hh_bf16,
                                         preferred_element_type=jnp.float32)
            sig = jax.nn.sigmoid(gates[:, :H3])      # i | f | o in one EUP launch
            i_g = sig[:, :H]
            f_g = sig[:, H:2 * H]
            o_g = sig[:, 2 * H:H3]
            g_g = jnp.tanh(gates[:, H3:])            # g gate
            c = f_g * c + i_g * g_g
            h = o_g * jnp.tanh(c)
            if store_seq:                            # raw h; BN is applied on the next
                seq_ref[t] = h                       # pass's batched projection instead
        return h, c

    zeros = jnp.zeros((B, H), jnp.float32)

    # ---- LSTM layer 1: one batched bf16 input projection, then the recurrence ----
    x_all = x_ref[...].reshape(T * B, -1).astype(jnp.bfloat16)            # (T*B, F)
    pre_ref[...] = (jnp.dot(x_all, w1_ref[...],
                            preferred_element_type=jnp.float32)
                    + b1_ref[...]).reshape(T, B, G)
    h, c = recurrent_pass(u1_ref[...], zeros, zeros, store_seq=n_layers > 1)

    # ---- (n_layers - 1) passes of the shared lstm2 ----
    # Eval-mode BN of the previous pass's output is applied here, on the batched
    # projection:  pre[t] = s_t * (h_t @ W2) + (sh_t * colsum(W2) + b2).
    # NOTE: pass k is seeded with pass k-1's FINAL (h, c)  => passes stay sequential.
    for k in range(n_layers - 1):
        s_all = seq_ref[...].reshape(T * B, H).astype(jnp.bfloat16)       # (T*B, H)
        pre_ref[...] = jnp.dot(s_all, w2_ref[...],
                               preferred_element_type=jnp.float32).reshape(T, B, G)
        for t in range(T):
            pre_ref[t] = pre_ref[t] * bn_s_ref[t] + shift2_ref[t]
        h, c = recurrent_pass(u2_ref[...], h, c, store_seq=k < n_layers - 2)

    # ---- final linear on the last hidden state (BN already folded host-side) ----
    # Lane-dense output: (8, H) @ (H, B) -> (8, B) slab (batch on lanes, unmasked store).
    out_ref[...] = (jnp.dot(lin_w_ref[...], h.T,
                            preferred_element_type=jnp.float32)
                    + lin_b_ref[0])


def prepare_kernel_params(params):
    """Permute gates to (i, f, o, g), cast matmul weights to bf16, fold BN & biases."""
    H = params["w_hh1"].shape[0]
    perm = jnp.concatenate([jnp.arange(0, H),            # i
                            jnp.arange(H, 2 * H),        # f
                            jnp.arange(3 * H, 4 * H),    # o
                            jnp.arange(2 * H, 3 * H)])   # g

    def permute(a):
        return a[:, perm]

    w1 = permute(params["w_ih1"])
    u1 = permute(params["w_hh1"])
    b1 = permute(params["b1"])
    w2 = permute(params["w_ih2"])
    u2 = permute(params["w_hh2"])
    b2 = permute(params["b2"])

    # Eval-mode BN folded to per-timestep (scale, shift).
    bn_scale = params["bn_g"] * lax.rsqrt(params["bn_v"] + BN_EPS)        # (T,)
    bn_shift = params["bn_b"] - params["bn_m"] * bn_scale                 # (T,)

    # BN shift folded through the lstm2 input projection (exact, kept in f32):
    #   (s_t*h + sh_t) @ W2 + b2 = s_t*(h @ W2) + sh_t*colsum(W2) + b2
    colsum_w2 = jnp.sum(w2, axis=0, keepdims=True)                        # (1, 4H)
    shift2 = (bn_shift[:, None, None] * colsum_w2[None, :, :]
              + b2[None, :, :]).astype(jnp.float32)                       # (T, 1, 4H)

    # BN at the last timestep folded into the final linear; weight row replicated to
    # 8 sublanes so the (8, H) @ (H, B) output matmul is sublane-aligned.
    lin_w = params["lin_w"][:, 0]                                         # (H,)
    lin_w_row = (bn_scale[-1] * lin_w)[None, :]                           # (1, H)
    lin_w_f = jnp.tile(lin_w_row, (8, 1)).astype(jnp.float32)             # (8, H)
    lin_b_f = (bn_shift[-1] * jnp.sum(lin_w)
               + params["lin_b"][0, 0]).reshape(1).astype(jnp.float32)    # (1,)

    return dict(
        w1=w1.astype(jnp.bfloat16), u1=u1.astype(jnp.bfloat16),
        w2=w2.astype(jnp.bfloat16), u2=u2.astype(jnp.bfloat16),
        b1=b1.astype(jnp.float32),
        shift2=shift2,
        bn_scale=bn_scale.astype(jnp.float32),
        lin_w=lin_w_f, lin_b=lin_b_f,
    )


def _pad_to(n, m):
    return -(-n // m) * m


def dalstm_forward(x, params, *, n_layers, batch_tile=None,
                   vmem_budget_bytes=24 * 2 ** 20):
    """x: (B, T, F) float32 -> (B,) float32   (return_squeezed=True path).

    batch_tile: rows per grid step.  Default picks a single grid step (whole 8-padded
    batch) when the scratch fits `vmem_budget_bytes` — optimal on v5e/v6e whose single
    TensorCore executes the grid serially — otherwise the largest multiple of 128 that
    fits (keeps output stores lane-dense).  On v7x, pass batch_tile ≈ cdiv(B, 2) rounded
    up to a multiple of 128 to get exactly two "parallel" grid steps for its two cores.
    """
    B, T, F = x.shape
    H = params["w_hh1"].shape[0]
    assert params["bn_g"].shape[0] == T, "sequence length must equal BatchNorm1d(max_len)"
    kp = prepare_kernel_params(params)

    # VMEM scratch per batch row (lane-padded): seq (T,·,H) + pre (T,·,4H) + 2x double-
    # buffered x input tile.  Used to size the default tile under the scoped-VMEM limit.
    pad_l = lambda n: _pad_to(n, 128)
    bytes_per_row = 4 * T * (pad_l(H) + pad_l(4 * H) + 2 * pad_l(F))
    if batch_tile is None:
        cap = max(8, int(vmem_budget_bytes // max(bytes_per_row, 1)))
        b8 = _pad_to(B, 8)
        batch_tile = b8 if b8 <= cap else max(128, (cap // 128) * 128)
    assert batch_tile % 8 == 0, "batch tile must be a multiple of 8 sublanes"

    Bp = _pad_to(B, batch_tile)
    n_btiles = Bp // batch_tile
    # Lane-dense output blocks: multi-step grids need 128-lane-aligned tiles.
    assert n_btiles == 1 or batch_tile % 128 == 0, \
        "use a batch_tile that is a multiple of 128 when the grid has more than 1 step"

    x = x.astype(jnp.float32)
    if Bp != B:
        x = jnp.pad(x, ((0, Bp - B), (0, 0), (0, 0)))
    # TODO(synk): this time-major relayout is a wrapper-side HBM pass; for very large
    # inputs feed time-major data upstream (or transpose per-tile inside the kernel).
    x_tbf = jnp.transpose(x, (1, 0, 2))                                   # (T, Bp, F)

    kernel = functools.partial(dalstm_kernel, n_layers=n_layers, T=T, H=H, B=batch_tile)
    vmem = pl.BlockSpec(memory_space=pltpu.MemorySpace.VMEM)
    smem = pl.BlockSpec(memory_space=pltpu.MemorySpace.SMEM)

    out = pl.pallas_call(
        kernel,
        out_shape=jax.ShapeDtypeStruct((8, Bp), jnp.float32),
        grid=(n_btiles,),
        in_specs=[pl.BlockSpec((T, batch_tile, F), lambda b: (0, b, 0)),  # x tile
                  vmem, vmem, vmem,                                       # w1, u1, b1
                  vmem, vmem, vmem,                                       # w2, u2, shift2
                  smem,                                                   # BN scale (T,)
                  vmem, smem],                                            # lin_w, lin_b
        out_specs=pl.BlockSpec((8, batch_tile), lambda b: (0, b)),        # lane-dense
        scratch_shapes=[pltpu.VMEM((T, batch_tile, H), jnp.float32),      # raw hidden seq
                        pltpu.VMEM((T, batch_tile, 4 * H), jnp.float32)], # pre-gates
        compiler_params=pltpu.CompilerParams(
            dimension_semantics=("parallel",),
            vmem_limit_bytes=32 * 2 ** 20),
    )(x_tbf,
      kp["w1"], kp["u1"], kp["b1"],
      kp["w2"], kp["u2"], kp["shift2"],
      kp["bn_scale"],
      kp["lin_w"], kp["lin_b"])
    return out[0, :B]                                                     # squeeze(dim=1)


def init_params(key, input_size, hidden_size, max_len):
    """Deterministic init mirroring PyTorch default shapes/scales.

    Weights are stored pre-transposed ((Fin, 4H)) in PyTorch gate order (i, f, g, o);
    the kernel-order permutation / bf16 cast / BN folding happen in
    prepare_kernel_params.  BN running stats / affine params are random so the
    per-timestep scale/shift path is exercised.
    """
    H = hidden_size
    bound = 1.0 / float(H) ** 0.5
    ks = jax.random.split(key, 14)

    def u(k, shape, b):
        return jax.random.uniform(k, shape, jnp.float32, -b, b)

    return dict(
        # lstm1: weight_ih (4H, F) -> stored transposed (F, 4H); biases b_ih + b_hh merged.
        w_ih1=u(ks[0], (input_size, 4 * H), bound),
        w_hh1=u(ks[1], (H, 4 * H), bound),
        b1=u(ks[2], (1, 4 * H), bound) + u(ks[3], (1, 4 * H), bound),
        # lstm2
        w_ih2=u(ks[4], (H, 4 * H), bound),
        w_hh2=u(ks[5], (H, 4 * H), bound),
        b2=u(ks[6], (1, 4 * H), bound) + u(ks[7], (1, 4 * H), bound),
        # BatchNorm1d(max_len): non-trivial eval-mode running stats / affine params.
        bn_g=0.5 + jax.random.uniform(ks[10], (max_len,), jnp.float32),
        bn_b=0.1 * jax.random.normal(ks[11], (max_len,), jnp.float32),
        bn_m=0.1 * jax.random.normal(ks[12], (max_len,), jnp.float32),
        bn_v=0.5 + jax.random.uniform(ks[13], (max_len,), jnp.float32),
        # linear1: weight (1, H) -> stored transposed (H, 1).
        lin_w=u(ks[8], (H, 1), bound),
        lin_b=u(ks[9], (1, 1), bound),
    )


def dalstm_ref(x, params, n_layers):
    """Pure-JAX f32 reference of the same forward pass (for verification)."""
    B, T, _ = x.shape
    H = params["w_hh1"].shape[0]

    def lstm(xseq, w_ih, w_hh, b, h, c):
        outs = []
        for t in range(T):
            g_all = xseq[:, t] @ w_ih + h @ w_hh + b
            i = jax.nn.sigmoid(g_all[:, :H])
            f = jax.nn.sigmoid(g_all[:, H:2 * H])
            g = jnp.tanh(g_all[:, 2 * H:3 * H])
            o = jax.nn.sigmoid(g_all[:, 3 * H:])
            c = f * c + i * g
            h = o * jnp.tanh(c)
            outs.append(h)
        return jnp.stack(outs, axis=1), h, c

    def bn(seq):
        m = params["bn_m"][None, :, None]
        v = params["bn_v"][None, :, None]
        g = params["bn_g"][None, :, None]
        bt = params["bn_b"][None, :, None]
        return (seq - m) * lax.rsqrt(v + BN_EPS) * g + bt

    z = jnp.zeros((B, H), jnp.float32)
    seq, h, c = lstm(x, params["w_ih1"], params["w_hh1"], params["b1"], z, z)
    seq = bn(seq)
    for _ in range(n_layers - 1):
        seq, h, c = lstm(seq, params["w_ih2"], params["w_hh2"], params["b2"], h, c)
        seq = bn(seq)
    return (seq[:, -1] @ params["lin_w"] + params["lin_b"])[:, 0]


if __name__ == "__main__":
    B, T, F, H, N_LAYERS = 4, 8, 16, 32, 2   # batch, max_len, input_size, hidden, layers

    key = jax.random.PRNGKey(0)
    kx, kp = jax.random.split(key)
    x = jax.random.normal(kx, (B, T, F), jnp.float32)
    params = init_params(kp, F, H, T)

    y = jax.block_until_ready(dalstm_forward(x, params, n_layers=N_LAYERS))
    assert y.shape == (B,), y.shape

    y_ref = jax.block_until_ready(dalstm_ref(x, params, N_LAYERS))
    # Tolerance statement: the kernel feeds the MXU bf16 operands (f32 accumulation),
    # while the reference runs pure-f32 matmuls, so ~1% relative disagreement through
    # the 2x8 serial LSTM steps is expected and accepted.
    assert jnp.allclose(y, y_ref, atol=2e-2, rtol=2e-2), (y, y_ref)

    print("KERNEL_OK")
</pallas_src>

<mosaic_0001>
module attributes {stable_mosaic.version = 11 : i64} {
  func.func @dalstm_kernel(%arg0: i32, %arg1: memref<8x8x16xf32, #tpu.memory_space<vmem>>, %arg2: memref<16x128xbf16, #tpu.memory_space<vmem>>, %arg3: memref<32x128xbf16, #tpu.memory_space<vmem>>, %arg4: memref<1x128xf32, #tpu.memory_space<vmem>>, %arg5: memref<32x128xbf16, #tpu.memory_space<vmem>>, %arg6: memref<32x128xbf16, #tpu.memory_space<vmem>>, %arg7: memref<8x1x128xf32, #tpu.memory_space<vmem>>, %arg8: memref<8xf32, #tpu.memory_space<smem>>, %arg9: memref<8x32xf32, #tpu.memory_space<vmem>>, %arg10: memref<1xf32, #tpu.memory_space<smem>>, %arg11: memref<8x8xf32, #tpu.memory_space<vmem>>, %arg12: memref<8x8x32xf32, #tpu.memory_space<vmem>>, %arg13: memref<8x8x128xf32, #tpu.memory_space<vmem>>) attributes {dimension_semantics = [#tpu.dimension_semantics<parallel>], iteration_bounds = array<i64: 1>, scalar_prefetch = 0 : i64, scratch_operands = 2 : i64, tpu.core_type = #tpu.core_type<tc>, window_params = [{transform_indices = @transform_0, window_bounds = array<i64: 8, 8, 16>}, {pipeline_mode = #tpu.pipeline_mode<synchronous>, transform_indices = @transform_1, window_bounds = array<i64: 16, 128>}, {pipeline_mode = #tpu.pipeline_mode<synchronous>, transform_indices = @transform_2, window_bounds = array<i64: 32, 128>}, {pipeline_mode = #tpu.pipeline_mode<synchronous>, transform_indices = @transform_3, window_bounds = array<i64: 1, 128>}, {pipeline_mode = #tpu.pipeline_mode<synchronous>, transform_indices = @transform_4, window_bounds = array<i64: 32, 128>}, {pipeline_mode = #tpu.pipeline_mode<synchronous>, transform_indices = @transform_5, window_bounds = array<i64: 32, 128>}, {pipeline_mode = #tpu.pipeline_mode<synchronous>, transform_indices = @transform_6, window_bounds = array<i64: 8, 1, 128>}, {transform_indices = @transform_7, window_bounds = array<i64: 8>}, {pipeline_mode = #tpu.pipeline_mode<synchronous>, transform_indices = @transform_8, window_bounds = array<i64: 8, 32>}, {transform_indices = @transform_9, window_bounds = array<i64: 1>}, {transform_indices = @transform_10, window_bounds = array<i64: 8, 8>}]} {
    %cst = arith.constant 0.000000e+00 : f32
    %0 = vector.broadcast %cst : f32 to vector<8x32xf32>
    %c0 = arith.constant 0 : index
    %c0_0 = arith.constant 0 : index
    %c0_1 = arith.constant 0 : index
    %1 = vector.load %arg1[%c0, %c0_0, %c0_1] : memref<8x8x16xf32, #tpu.memory_space<vmem>>, vector<8x8x16xf32>
    %2 = vector.shape_cast %1 : vector<8x8x16xf32> to vector<64x16xf32>
    %3 = arith.truncf %2 : vector<64x16xf32> to vector<64x16xbf16>
    %c0_2 = arith.constant 0 : index
    %c0_3 = arith.constant 0 : index
    %4 = vector.load %arg2[%c0_2, %c0_3] : memref<16x128xbf16, #tpu.memory_space<vmem>>, vector<16x128xbf16>
    %cst_4 = arith.constant dense<0.000000e+00> : vector<64x128xf32>
    %5 = tpu.matmul %3, %4, %cst_4 {dimension_numbers = #tpu.dot_dimension_numbers<[1], [0], [0], [1], [0, 0, 1, 1], [], []>} : vector<64x16xbf16>, vector<16x128xbf16>, vector<64x128xf32> -> vector<64x128xf32>
    %c0_5 = arith.constant 0 : index
    %c0_6 = arith.constant 0 : index
    %6 = vector.load %arg4[%c0_5, %c0_6] : memref<1x128xf32, #tpu.memory_space<vmem>>, vector<1x128xf32>
    %7 = vector.broadcast %6 : vector<1x128xf32> to vector<64x128xf32>
    %8 = arith.addf %5, %7 : vector<64x128xf32>
    %9 = vector.shape_cast %8 : vector<64x128xf32> to vector<8x8x128xf32>
    %c0_7 = arith.constant 0 : index
    %c0_8 = arith.constant 0 : index
    %c0_9 = arith.constant 0 : index
    %10 = vector.load %arg13[%c0_7, %c0_8, %c0_9] : memref<8x8x128xf32, #tpu.memory_space<vmem>>, vector<8x8x128xf32>
    tpu.vector_store %arg13[%c0_7, %c0_8, %c0_9], %9 {strides = array<i32>} : memref<8x8x128xf32, #tpu.memory_space<vmem>>, vector<8x8x128xf32>,
    %c0_10 = arith.constant 0 : index
    %c0_11 = arith.constant 0 : index
    %11 = vector.load %arg3[%c0_10, %c0_11] : memref<32x128xbf16, #tpu.memory_space<vmem>>, vector<32x128xbf16>
    %c0_12 = arith.constant 0 : index
    %c0_13 = arith.constant 0 : index
    %c0_14 = arith.constant 0 : index
    %12 = vector.load %arg13[%c0_12, %c0_13, %c0_14] : memref<8x8x128xf32, #tpu.memory_space<vmem>>, vector<1x8x128xf32>
    %13 = vector.shape_cast %12 : vector<1x8x128xf32> to vector<8x128xf32>
    %14 = arith.truncf %0 : vector<8x32xf32> to vector<8x32xbf16>
    %cst_15 = arith.constant dense<0.000000e+00> : vector<8x128xf32>
    %15 = tpu.matmul %14, %11, %cst_15 {dimension_numbers = #tpu.dot_dimension_numbers<[1], [0], [0], [1], [0, 0, 1, 1], [], []>} : vector<8x32xbf16>, vector<32x128xbf16>, vector<8x128xf32> -> vector<8x128xf32>
    %16 = arith.addf %13, %15 : vector<8x128xf32>
    %17 = vector.extract_strided_slice %16 {offsets = [0, 0], sizes = [8, 96], strides = [1, 1]} : vector<8x128xf32> to vector<8x96xf32>
    %18 = arith.negf %17 : vector<8x96xf32>
    %19 = math.exp %18 : vector<8x96xf32>
    %cst_16 = arith.constant 1.000000e+00 : f32
    %20 = vector.broadcast %cst_16 : f32 to vector<8x96xf32>
    %21 = arith.addf %20, %19 : vector<8x96xf32>
    %22 = arith.divf %20, %21 : vector<8x96xf32>
    %23 = vector.extract_strided_slice %22 {offsets = [0, 0], sizes = [8, 32], strides = [1, 1]} : vector<8x96xf32> to vector<8x32xf32>
    %24 = vector.extract_strided_slice %22 {offsets = [0, 32], sizes = [8, 32], strides = [1, 1]} : vector<8x96xf32> to vector<8x32xf32>
    %25 = vector.extract_strided_slice %22 {offsets = [0, 64], sizes = [8, 32], strides = [1, 1]} : vector<8x96xf32> to vector<8x32xf32>
    %26 = vector.extract_strided_slice %16 {offsets = [0, 96], sizes = [8, 32], strides = [1, 1]} : vector<8x128xf32> to vector<8x32xf32>
    %27 = math.tanh %26 : vector<8x32xf32>
    %28 = arith.mulf %24, %0 : vector<8x32xf32>
    %29 = arith.mulf %23, %27 : vector<8x32xf32>
    %30 = arith.addf %28, %29 : vector<8x32xf32>
    %31 = math.tanh %30 : vector<8x32xf32>
    %32 = arith.mulf %25, %31 : vector<8x32xf32>
    %c0_17 = arith.constant 0 : index
    %c0_18 = arith.constant 0 : index
    %c0_19 = arith.constant 0 : index
    %33 = vector.load %arg12[%c0_17, %c0_18, %c0_19] : memref<8x8x32xf32, #tpu.memory_space<vmem>>, vector<1x8x32xf32>
    %34 = vector.shape_cast %33 : vector<1x8x32xf32> to vector<8x32xf32>
    %35 = vector.shape_cast %32 : vector<8x32xf32> to vector<1x8x32xf32>
    tpu.vector_store %arg12[%c0_17, %c0_18, %c0_19], %35 {strides = array<i32>} : memref<8x8x32xf32, #tpu.memory_space<vmem>>, vector<1x8x32xf32>,
    %c1 = arith.constant 1 : index
    %c0_20 = arith.constant 0 : index
    %c0_21 = arith.constant 0 : index
    %36 = vector.load %arg13[%c1, %c0_20, %c0_21] : memref<8x8x128xf32, #tpu.memory_space<vmem>>, vector<1x8x128xf32>
    %37 = vector.shape_cast %36 : vector<1x8x128xf32> to vector<8x128xf32>
    %38 = arith.truncf %32 : vector<8x32xf32> to vector<8x32xbf16>
    %cst_22 = arith.constant dense<0.000000e+00> : vector<8x128xf32>
    %39 = tpu.matmul %38, %11, %cst_22 {dimension_numbers = #tpu.dot_dimension_numbers<[1], [0], [0], [1], [0, 0, 1, 1], [], []>} : vector<8x32xbf16>, vector<32x128xbf16>, vector<8x128xf32> -> vector<8x128xf32>
    %40 = arith.addf %37, %39 : vector<8x128xf32>
    %41 = vector.extract_strided_slice %40 {offsets = [0, 0], sizes = [8, 96], strides = [1, 1]} : vector<8x128xf32> to vector<8x96xf32>
    %42 = arith.negf %41 : vector<8x96xf32>
    %43 = math.exp %42 : vector<8x96xf32>
    %cst_23 = arith.constant 1.000000e+00 : f32
    %44 = vector.broadcast %cst_23 : f32 to vector<8x96xf32>
    %45 = arith.addf %44, %43 : vector<8x96xf32>
    %46 = arith.divf %44, %45 : vector<8x96xf32>
    %47 = vector.extract_strided_slice %46 {offsets = [0, 0], sizes = [8, 32], strides = [1, 1]} : vector<8x96xf32> to vector<8x32xf32>
    %48 = vector.extract_strided_slice %46 {offsets = [0, 32], sizes = [8, 32], strides = [1, 1]} : vector<8x96xf32> to vector<8x32xf32>
    %49 = vector.extract_strided_slice %46 {offsets = [0, 64], sizes = [8, 32], strides = [1, 1]} : vector<8x96xf32> to vector<8x32xf32>
    %50 = vector.extract_strided_slice %40 {offsets = [0, 96], sizes = [8, 32], strides = [1, 1]} : vector<8x128xf32> to vector<8x32xf32>
    %51 = math.tanh %50 : vector<8x32xf32>
    %52 = arith.mulf %48, %30 : vector<8x32xf32>
    %53 = arith.mulf %47, %51 : vector<8x32xf32>
    %54 = arith.addf %52, %53 : vector<8x32xf32>
    %55 = math.tanh %54 : vector<8x32xf32>
    %56 = arith.mulf %49, %55 : vector<8x32xf32>
    %c1_24 = arith.constant 1 : index
    %c0_25 = arith.constant 0 : index
    %c0_26 = arith.constant 0 : index
    %57 = vector.load %arg12[%c1_24, %c0_25, %c0_26] : memref<8x8x32xf32, #tpu.memory_space<vmem>>, vector<1x8x32xf32>
    %58 = vector.shape_cast %57 : vector<1x8x32xf32> to vector<8x32xf32>
    %59 = vector.shape_cast %56 : vector<8x32xf32> to vector<1x8x32xf32>
    tpu.vector_store %arg12[%c1_24, %c0_25, %c0_26], %59 {strides = array<i32>} : memref<8x8x32xf32, #tpu.memory_space<vmem>>, vector<1x8x32xf32>,
    %c2 = arith.constant 2 : index
    %c0_27 = arith.constant 0 : index
    %c0_28 = arith.constant 0 : index
    %60 = vector.load %arg13[%c2, %c0_27, %c0_28] : memref<8x8x128xf32, #tpu.memory_space<vmem>>, vector<1x8x128xf32>
    %61 = vector.shape_cast %60 : vector<1x8x128xf32> to vector<8x128xf32>
    %62 = arith.truncf %56 : vector<8x32xf32> to vector<8x32xbf16>
    %cst_29 = arith.constant dense<0.000000e+00> : vector<8x128xf32>
    %63 = tpu.matmul %62, %11, %cst_29 {dimension_numbers = #tpu.dot_dimension_numbers<[1], [0], [0], [1], [0, 0, 1, 1], [], []>} : vector<8x32xbf16>, vector<32x128xbf16>, vector<8x128xf32> -> vector<8x128xf32>
    %64 = arith.addf %61, %63 : vector<8x128xf32>
    %65 = vector.extract_strided_slice %64 {offsets = [0, 0], sizes = [8, 96], strides = [1, 1]} : vector<8x128xf32> to vector<8x96xf32>
    %66 = arith.negf %65 : vector<8x96xf32>
    %67 = math.exp %66 : vector<8x96xf32>
    %cst_30 = arith.constant 1.000000e+00 : f32
    %68 = vector.broadcast %cst_30 : f32 to vector<8x96xf32>
    %69 = arith.addf %68, %67 : vector<8x96xf32>
    %70 = arith.divf %68, %69 : vector<8x96xf32>
    %71 = vector.extract_strided_slice %70 {offsets = [0, 0], sizes = [8, 32], strides = [1, 1]} : vector<8x96xf32> to vector<8x32xf32>
    %72 = vector.extract_strided_slice %70 {offsets = [0, 32], sizes = [8, 32], strides = [1, 1]} : vector<8x96xf32> to vector<8x32xf32>
    %73 = vector.extract_strided_slice %70 {offsets = [0, 64], sizes = [8, 32], strides = [1, 1]} : vector<8x96xf32> to vector<8x32xf32>
    %74 = vector.extract_strided_slice %64 {offsets = [0, 96], sizes = [8, 32], strides = [1, 1]} : vector<8x128xf32> to vector<8x32xf32>
    %75 = math.tanh %74 : vector<8x32xf32>
    %76 = arith.mulf %72, %54 : vector<8x32xf32>
    %77 = arith.mulf %71, %75 : vector<8x32xf32>
    %78 = arith.addf %76, %77 : vector<8x32xf32>
    %79 = math.tanh %78 : vector<8x32xf32>
    %80 = arith.mulf %73, %79 : vector<8x32xf32>
    %c2_31 = arith.constant 2 : index
    %c0_32 = arith.constant 0 : index
    %c0_33 = arith.constant 0 : index
    %81 = vector.load %arg12[%c2_31, %c0_32, %c0_33] : memref<8x8x32xf32, #tpu.memory_space<vmem>>, vector<1x8x32xf32>
    %82 = vector.shape_cast %81 : vector<1x8x32xf32> to vector<8x32xf32>
    %83 = vector.shape_cast %80 : vector<8x32xf32> to vector<1x8x32xf32>
    tpu.vector_store %arg12[%c2_31, %c0_32, %c0_33], %83 {strides = array<i32>} : memref<8x8x32xf32, #tpu.memory_space<vmem>>, vector<1x8x32xf32>,
    %c3 = arith.constant 3 : index
    %c0_34 = arith.constant 0 : index
    %c0_35 = arith.constant 0 : index
    %84 = vector.load %arg13[%c3, %c0_34, %c0_35] : memref<8x8x128xf32, #tpu.memory_space<vmem>>, vector<1x8x128xf32>
    %85 = vector.shape_cast %84 : vector<1x8x128xf32> to vector<8x128xf32>
    %86 = arith.truncf %80 : vector<8x32xf32> to vector<8x32xbf16>
    %cst_36 = arith.constant dense<0.000000e+00> : vector<8x128xf32>
    %87 = tpu.matmul %86, %11, %cst_36 {dimension_numbers = #tpu.dot_dimension_numbers<[1], [0], [0], [1], [0, 0, 1, 1], [], []>} : vector<8x32xbf16>, vector<32x128xbf16>, vector<8x128xf32> -> vector<8x128xf32>
    %88 = arith.addf %85, %87 : vector<8x128xf32>
    %89 = vector.extract_strided_slice %88 {offsets = [0, 0], sizes = [8, 96], strides = [1, 1]} : vector<8x128xf32> to vector<8x96xf32>
    %90 = arith.negf %89 : vector<8x96xf32>
    %91 = math.exp %90 : vector<8x96xf32>
    %cst_37 = arith.constant 1.000000e+00 : f32
    %92 = vector.broadcast %cst_37 : f32 to vector<8x96xf32>
    %93 = arith.addf %92, %91 : vector<8x96xf32>
    %94 = arith.divf %92, %93 : vector<8x96xf32>
    %95 = vector.extract_strided_slice %94 {offsets = [0, 0], sizes = [8, 32], strides = [1, 1]} : vector<8x96xf32> to vector<8x32xf32>
    %96 = vector.extract_strided_slice %94 {offsets = [0, 32], sizes = [8, 32], strides = [1, 1]} : vector<8x96xf32> to vector<8x32xf32>
    %97 = vector.extract_strided_slice %94 {offsets = [0, 64], sizes = [8, 32], strides = [1, 1]} : vector<8x96xf32> to vector<8x32xf32>
    %98 = vector.extract_strided_slice %88 {offsets = [0, 96], sizes = [8, 32], strides = [1, 1]} : vector<8x128xf32> to vector<8x32xf32>
    %99 = math.tanh %98 : vector<8x32xf32>
    %100 = arith.mulf %96, %78 : vector<8x32xf32>
    %101 = arith.mulf %95, %99 : vector<8x32xf32>
    %102 = arith.addf %100, %101 : vector<8x32xf32>
    %103 = math.tanh %102 : vector<8x32xf32>
    %104 = arith.mulf %97, %103 : vector<8x32xf32>
    %c3_38 = arith.constant 3 : index
    %c0_39 = arith.constant 0 : index
    %c0_40 = arith.constant 0 : index
    %105 = vector.load %arg12[%c3_38, %c0_39, %c0_40] : memref<8x8x32xf32, #tpu.memory_space<vmem>>, vector<1x8x32xf32>
    %106 = vector.shape_cast %105 : vector<1x8x32xf32> to vector<8x32xf32>
    %107 = vector.shape_cast %104 : vector<8x32xf32> to vector<1x8x32xf32>
    tpu.vector_store %arg12[%c3_38, %c0_39, %c0_40], %107 {strides = array<i32>} : memref<8x8x32xf32, #tpu.memory_space<vmem>>, vector<1x8x32xf32>,
    %c4 = arith.constant 4 : index
    %c0_41 = arith.constant 0 : index
    %c0_42 = arith.constant 0 : index
    %108 = vector.load %arg13[%c4, %c0_41, %c0_42] : memref<8x8x128xf32, #tpu.memory_space<vmem>>, vector<1x8x128xf32>
    %109 = vector.shape_cast %108 : vector<1x8x128xf32> to vector<8x128xf32>
    %110 = arith.truncf %104 : vector<8x32xf32> to vector<8x32xbf16>
    %cst_43 = arith.constant dense<0.000000e+00> : vector<8x128xf32>
    %111 = tpu.matmul %110, %11, %cst_43 {dimension_numbers = #tpu.dot_dimension_numbers<[1], [0], [0], [1], [0, 0, 1, 1], [], []>} : vector<8x32xbf16>, vector<32x128xbf16>, vector<8x128xf32> -> vector<8x128xf32>
    %112 = arith.addf %109, %111 : vector<8x128xf32>
    %113 = vector.extract_strided_slice %112 {offsets = [0, 0], sizes = [8, 96], strides = [1, 1]} : vector<8x128xf32> to vector<8x96xf32>
    %114 = arith.negf %113 : vector<8x96xf32>
    %115 = math.exp %114 : vector<8x96xf32>
    %cst_44 = arith.constant 1.000000e+00 : f32
    %116 = vector.broadcast %cst_44 : f32 to vector<8x96xf32>
    %117 = arith.addf %116, %115 : vector<8x96xf32>
    %118 = arith.divf %116, %117 : vector<8x96xf32>
    %119 = vector.extract_strided_slice %118 {offsets = [0, 0], sizes = [8, 32], strides = [1, 1]} : vector<8x96xf32> to vector<8x32xf32>
    %120 = vector.extract_strided_slice %118 {offsets = [0, 32], sizes = [8, 32], strides = [1, 1]} : vector<8x96xf32> to vector<8x32xf32>
    %121 = vector.extract_strided_slice %118 {offsets = [0, 64], sizes = [8, 32], strides = [1, 1]} : vector<8x96xf32> to vector<8x32xf32>
    %122 = vector.extract_strided_slice %112 {offsets = [0, 96], sizes = [8, 32], strides = [1, 1]} : vector<8x128xf32> to vector<8x32xf32>
    %123 = math.tanh %122 : vector<8x32xf32>
    %124 = arith.mulf %120, %102 : vector<8x32xf32>
    %125 = arith.mulf %119, %123 : vector<8x32xf32>
    %126 = arith.addf %124, %125 : vector<8x32xf32>
    %127 = math.tanh %126 : vector<8x32xf32>
    %128 = arith.mulf %121, %127 : vector<8x32xf32>
    %c4_45 = arith.constant 4 : index
    %c0_46 = arith.constant 0 : index
    %c0_47 = arith.constant 0 : index
    %129 = vector.load %arg12[%c4_45, %c0_46, %c0_47] : memref<8x8x32xf32, #tpu.memory_space<vmem>>, vector<1x8x32xf32>
    %130 = vector.shape_cast %129 : vector<1x8x32xf32> to vector<8x32xf32>
    %131 = vector.shape_cast %128 : vector<8x32xf32> to vector<1x8x32xf32>
    tpu.vector_store %arg12[%c4_45, %c0_46, %c0_47], %131 {strides = array<i32>} : memref<8x8x32xf32, #tpu.memory_space<vmem>>, vector<1x8x32xf32>,
    %c5 = arith.constant 5 : index
    %c0_48 = arith.constant 0 : index
    %c0_49 = arith.constant 0 : index
    %132 = vector.load %arg13[%c5, %c0_48, %c0_49] : memref<8x8x128xf32, #tpu.memory_space<vmem>>, vector<1x8x128xf32>
    %133 = vector.shape_cast %132 : vector<1x8x128xf32> to vector<8x128xf32>
    %134 = arith.truncf %128 : vector<8x32xf32> to vector<8x32xbf16>
    %cst_50 = arith.constant dense<0.000000e+00> : vector<8x128xf32>
    %135 = tpu.matmul %134, %11, %cst_50 {dimension_numbers = #tpu.dot_dimension_numbers<[1], [0], [0], [1], [0, 0, 1, 1], [], []>} : vector<8x32xbf16>, vector<32x128xbf16>, vector<8x128xf32> -> vector<8x128xf32>
    %136 = arith.addf %133, %135 : vector<8x128xf32>
    %137 = vector.extract_strided_slice %136 {offsets = [0, 0], sizes = [8, 96], strides = [1, 1]} : vector<8x128xf32> to vector<8x96xf32>
    %138 = arith.negf %137 : vector<8x96xf32>
    %139 = math.exp %138 : vector<8x96xf32>
    %cst_51 = arith.constant 1.000000e+00 : f32
    %140 = vector.broadcast %cst_51 : f32 to vector<8x96xf32>
    %141 = arith.addf %140, %139 : vector<8x96xf32>
    %142 = arith.divf %140, %141 : vector<8x96xf32>
    %143 = vector.extract_strided_slice %142 {offsets = [0, 0], sizes = [8, 32], strides = [1, 1]} : vector<8x96xf32> to vector<8x32xf32>
    %144 = vector.extract_strided_slice %142 {offsets = [0, 32], sizes = [8, 32], strides = [1, 1]} : vector<8x96xf32> to vector<8x32xf32>
    %145 = vector.extract_strided_slice %142 {offsets = [0, 64], sizes = [8, 32], strides = [1, 1]} : vector<8x96xf32> to vector<8x32xf32>
    %146 = vector.extract_strided_slice %136 {offsets = [0, 96], sizes = [8, 32], strides = [1, 1]} : vector<8x128xf32> to vector<8x32xf32>
    %147 = math.tanh %146 : vector<8x32xf32>
    %148 = arith.mulf %144, %126 : vector<8x32xf32>
    %149 = arith.mulf %143, %147 : vector<8x32xf32>
    %150 = arith.addf %148, %149 : vector<8x32xf32>
    %151 = math.tanh %150 : vector<8x32xf32>
    %152 = arith.mulf %145, %151 : vector<8x32xf32>
    %c5_52 = arith.constant 5 : index
    %c0_53 = arith.constant 0 : index
    %c0_54 = arith.constant 0 : index
    %153 = vector.load %arg12[%c5_52, %c0_53, %c0_54] : memref<8x8x32xf32, #tpu.memory_space<vmem>>, vector<1x8x32xf32>
    %154 = vector.shape_cast %153 : vector<1x8x32xf32> to vector<8x32xf32>
    %155 = vector.shape_cast %152 : vector<8x32xf32> to vector<1x8x32xf32>
    tpu.vector_store %arg12[%c5_52, %c0_53, %c0_54], %155 {strides = array<i32>} : memref<8x8x32xf32, #tpu.memory_space<vmem>>, vector<1x8x32xf32>,
    %c6 = arith.constant 6 : index
    %c0_55 = arith.constant 0 : index
    %c0_56 = arith.constant 0 : index
    %156 = vector.load %arg13[%c6, %c0_55, %c0_56] : memref<8x8x128xf32, #tpu.memory_space<vmem>>, vector<1x8x128xf32>
    %157 = vector.shape_cast %156 : vector<1x8x128xf32> to vector<8x128xf32>
    %158 = arith.truncf %152 : vector<8x32xf32> to vector<8x32xbf16>
    %cst_57 = arith.constant dense<0.000000e+00> : vector<8x128xf32>
    %159 = tpu.matmul %158, %11, %cst_57 {dimension_numbers = #tpu.dot_dimension_numbers<[1], [0], [0], [1], [0, 0, 1, 1], [], []>} : vector<8x32xbf16>, vector<32x128xbf16>, vector<8x128xf32> -> vector<8x128xf32>
    %160 = arith.addf %157, %159 : vector<8x128xf32>
    %161 = vector.extract_strided_slice %160 {offsets = [0, 0], sizes = [8, 96], strides = [1, 1]} : vector<8x128xf32> to vector<8x96xf32>
    %162 = arith.negf %161 : vector<8x96xf32>
    %163 = math.exp %162 : vector<8x96xf32>
    %cst_58 = arith.constant 1.000000e+00 : f32
    %164 = vector.broadcast %cst_58 : f32 to vector<8x96xf32>
    %165 = arith.addf %164, %163 : vector<8x96xf32>
    %166 = arith.divf %164, %165 : vector<8x96xf32>
    %167 = vector.extract_strided_slice %166 {offsets = [0, 0], sizes = [8, 32], strides = [1, 1]} : vector<8x96xf32> to vector<8x32xf32>
    %168 = vector.extract_strided_slice %166 {offsets = [0, 32], sizes = [8, 32], strides = [1, 1]} : vector<8x96xf32> to vector<8x32xf32>
    %169 = vector.extract_strided_slice %166 {offsets = [0, 64], sizes = [8, 32], strides = [1, 1]} : vector<8x96xf32> to vector<8x32xf32>
    %170 = vector.extract_strided_slice %160 {offsets = [0, 96], sizes = [8, 32], strides = [1, 1]} : vector<8x128xf32> to vector<8x32xf32>
    %171 = math.tanh %170 : vector<8x32xf32>
    %172 = arith.mulf %168, %150 : vector<8x32xf32>
    %173 = arith.mulf %167, %171 : vector<8x32xf32>
    %174 = arith.addf %172, %173 : vector<8x32xf32>
    %175 = math.tanh %174 : vector<8x32xf32>
    %176 = arith.mulf %169, %175 : vector<8x32xf32>
    %c6_59 = arith.constant 6 : index
    %c0_60 = arith.constant 0 : index
    %c0_61 = arith.constant 0 : index
    %177 = vector.load %arg12[%c6_59, %c0_60, %c0_61] : memref<8x8x32xf32, #tpu.memory_space<vmem>>, vector<1x8x32xf32>
    %178 = vector.shape_cast %177 : vector<1x8x32xf32> to vector<8x32xf32>
    %179 = vector.shape_cast %176 : vector<8x32xf32> to vector<1x8x32xf32>
    tpu.vector_store %arg12[%c6_59, %c0_60, %c0_61], %179 {strides = array<i32>} : memref<8x8x32xf32, #tpu.memory_space<vmem>>, vector<1x8x32xf32>,
    %c7 = arith.constant 7 : index
    %c0_62 = arith.constant 0 : index
    %c0_63 = arith.constant 0 : index
    %180 = vector.load %arg13[%c7, %c0_62, %c0_63] : memref<8x8x128xf32, #tpu.memory_space<vmem>>, vector<1x8x128xf32>
    %181 = vector.shape_cast %180 : vector<1x8x128xf32> to vector<8x128xf32>
    %182 = arith.truncf %176 : vector<8x32xf32> to vector<8x32xbf16>
    %cst_64 = arith.constant dense<0.000000e+00> : vector<8x128xf32>
    %183 = tpu.matmul %182, %11, %cst_64 {dimension_numbers = #tpu.dot_dimension_numbers<[1], [0], [0], [1], [0, 0, 1, 1], [], []>} : vector<8x32xbf16>, vector<32x128xbf16>, vector<8x128xf32> -> vector<8x128xf32>
    %184 = arith.addf %181, %183 : vector<8x128xf32>
    %185 = vector.extract_strided_slice %184 {offsets = [0, 0], sizes = [8, 96], strides = [1, 1]} : vector<8x128xf32> to vector<8x96xf32>
    %186 = arith.negf %185 : vector<8x96xf32>
    %187 = math.exp %186 : vector<8x96xf32>
    %cst_65 = arith.constant 1.000000e+00 : f32
    %188 = vector.broadcast %cst_65 : f32 to vector<8x96xf32>
    %189 = arith.addf %188, %187 : vector<8x96xf32>
    %190 = arith.divf %188, %189 : vector<8x96xf32>
    %191 = vector.extract_strided_slice %190 {offsets = [0, 0], sizes = [8, 32], strides = [1, 1]} : vector<8x96xf32> to vector<8x32xf32>
    %192 = vector.extract_strided_slice %190 {offsets = [0, 32], sizes = [8, 32], strides = [1, 1]} : vector<8x96xf32> to vector<8x32xf32>
    %193 = vector.extract_strided_slice %190 {offsets = [0, 64], sizes = [8, 32], strides = [1, 1]} : vector<8x96xf32> to vector<8x32xf32>
    %194 = vector.extract_strided_slice %184 {offsets = [0, 96], sizes = [8, 32], strides = [1, 1]} : vector<8x128xf32> to vector<8x32xf32>
    %195 = math.tanh %194 : vector<8x32xf32>
    %196 = arith.mulf %192, %174 : vector<8x32xf32>
    %197 = arith.mulf %191, %195 : vector<8x32xf32>
    %198 = arith.addf %196, %197 : vector<8x32xf32>
    %199 = math.tanh %198 : vector<8x32xf32>
    %200 = arith.mulf %193, %199 : vector<8x32xf32>
    %c7_66 = arith.constant 7 : index
    %c0_67 = arith.constant 0 : index
    %c0_68 = arith.constant 0 : index
    %201 = vector.load %arg12[%c7_66, %c0_67, %c0_68] : memref<8x8x32xf32, #tpu.memory_space<vmem>>, vector<1x8x32xf32>
    %202 = vector.shape_cast %201 : vector<1x8x32xf32> to vector<8x32xf32>
    %203 = vector.shape_cast %200 : vector<8x32xf32> to vector<1x8x32xf32>
    tpu.vector_store %arg12[%c7_66, %c0_67, %c0_68], %203 {strides = array<i32>} : memref<8x8x32xf32, #tpu.memory_space<vmem>>, vector<1x8x32xf32>,
    %c0_69 = arith.constant 0 : index
    %c0_70 = arith.constant 0 : index
    %c0_71 = arith.constant 0 : index
    %204 = vector.load %arg12[%c0_69, %c0_70, %c0_71] : memref<8x8x32xf32, #tpu.memory_space<vmem>>, vector<8x8x32xf32>
    %205 = vector.shape_cast %204 : vector<8x8x32xf32> to vector<64x32xf32>
    %206 = arith.truncf %205 : vector<64x32xf32> to vector<64x32xbf16>
    %c0_72 = arith.constant 0 : index
    %c0_73 = arith.constant 0 : index
    %207 = vector.load %arg5[%c0_72, %c0_73] : memref<32x128xbf16, #tpu.memory_space<vmem>>, vector<32x128xbf16>
    %cst_74 = arith.constant dense<0.000000e+00> : vector<64x128xf32>
    %208 = tpu.matmul %206, %207, %cst_74 {dimension_numbers = #tpu.dot_dimension_numbers<[1], [0], [0], [1], [0, 0, 1, 1], [], []>} : vector<64x32xbf16>, vector<32x128xbf16>, vector<64x128xf32> -> vector<64x128xf32>
    %209 = vector.shape_cast %208 : vector<64x128xf32> to vector<8x8x128xf32>
    %c0_75 = arith.constant 0 : index
    %c0_76 = arith.constant 0 : index
    %c0_77 = arith.constant 0 : index
    %210 = vector.load %arg13[%c0_75, %c0_76, %c0_77] : memref<8x8x128xf32, #tpu.memory_space<vmem>>, vector<8x8x128xf32>
    tpu.vector_store %arg13[%c0_75, %c0_76, %c0_77], %209 {strides = array<i32>} : memref<8x8x128xf32, #tpu.memory_space<vmem>>, vector<8x8x128xf32>,
    %c0_78 = arith.constant 0 : index
    %c0_79 = arith.constant 0 : index
    %c0_80 = arith.constant 0 : index
    %211 = vector.load %arg13[%c0_78, %c0_79, %c0_80] : memref<8x8x128xf32, #tpu.memory_space<vmem>>, vector<1x8x128xf32>
    %212 = vector.shape_cast %211 : vector<1x8x128xf32> to vector<8x128xf32>
    %c0_81 = arith.constant 0 : index
    %213 = memref.load %arg8[%c0_81] : memref<8xf32, #tpu.memory_space<smem>>
    %214 = vector.broadcast %213 : f32 to vector<8x128xf32>
    %215 = arith.mulf %212, %214 : vector<8x128xf32>
    %c0_82 = arith.constant 0 : index
    %c0_83 = arith.constant 0 : index
    %c0_84 = arith.constant 0 : index
    %216 = vector.load %arg7[%c0_82, %c0_83, %c0_84] : memref<8x1x128xf32, #tpu.memory_space<vmem>>, vector<1x1x128xf32>
    %217 = vector.shape_cast %216 : vector<1x1x128xf32> to vector<1x128xf32>
    %218 = vector.broadcast %217 : vector<1x128xf32> to vector<8x128xf32>
    %219 = arith.addf %215, %218 : vector<8x128xf32>
    %c0_85 = arith.constant 0 : index
    %c0_86 = arith.constant 0 : index
    %c0_87 = arith.constant 0 : index
    %220 = vector.load %arg13[%c0_85, %c0_86, %c0_87] : memref<8x8x128xf32, #tpu.memory_space<vmem>>, vector<1x8x128xf32>
    %221 = vector.shape_cast %220 : vector<1x8x128xf32> to vector<8x128xf32>
    %222 = vector.shape_cast %219 : vector<8x128xf32> to vector<1x8x128xf32>
    tpu.vector_store %arg13[%c0_85, %c0_86, %c0_87], %222 {strides = array<i32>} : memref<8x8x128xf32, #tpu.memory_space<vmem>>, vector<1x8x128xf32>,
    %c1_88 = arith.constant 1 : index
    %c0_89 = arith.constant 0 : index
    %c0_90 = arith.constant 0 : index
    %223 = vector.load %arg13[%c1_88, %c0_89, %c0_90] : memref<8x8x128xf32, #tpu.memory_space<vmem>>, vector<1x8x128xf32>
    %224 = vector.shape_cast %223 : vector<1x8x128xf32> to vector<8x128xf32>
    %c1_91 = arith.constant 1 : index
    %225 = memref.load %arg8[%c1_91] : memref<8xf32, #tpu.memory_space<smem>>
    %226 = vector.broadcast %225 : f32 to vector<8x128xf32>
    %227 = arith.mulf %224, %226 : vector<8x128xf32>
    %c1_92 = arith.constant 1 : index
    %c0_93 = arith.constant 0 : index
    %c0_94 = arith.constant 0 : index
    %228 = vector.load %arg7[%c1_92, %c0_93, %c0_94] : memref<8x1x128xf32, #tpu.memory_space<vmem>>, vector<1x1x128xf32>
    %229 = vector.shape_cast %228 : vector<1x1x128xf32> to vector<1x128xf32>
    %230 = vector.broadcast %229 : vector<1x128xf32> to vector<8x128xf32>
    %231 = arith.addf %227, %230 : vector<8x128xf32>
    %c1_95 = arith.constant 1 : index
    %c0_96 = arith.constant 0 : index
    %c0_97 = arith.constant 0 : index
    %232 = vector.load %arg13[%c1_95, %c0_96, %c0_97] : memref<8x8x128xf32, #tpu.memory_space<vmem>>, vector<1x8x128xf32>
    %233 = vector.shape_cast %232 : vector<1x8x128xf32> to vector<8x128xf32>
    %234 = vector.shape_cast %231 : vector<8x128xf32> to vector<1x8x128xf32>
    tpu.vector_store %arg13[%c1_95, %c0_96, %c0_97], %234 {strides = array<i32>} : memref<8x8x128xf32, #tpu.memory_space<vmem>>, vector<1x8x128xf32>,
    %c2_98 = arith.constant 2 : index
    %c0_99 = arith.constant 0 : index
    %c0_100 = arith.constant 0 : index
    %235 = vector.load %arg13[%c2_98, %c0_99, %c0_100] : memref<8x8x128xf32, #tpu.memory_space<vmem>>, vector<1x8x128xf32>
    %236 = vector.shape_cast %235 : vector<1x8x128xf32> to vector<8x128xf32>
    %c2_101 = arith.constant 2 : index
    %237 = memref.load %arg8[%c2_101] : memref<8xf32, #tpu.memory_space<smem>>
    %238 = vector.broadcast %237 : f32 to vector<8x128xf32>
    %239 = arith.mulf %236, %238 : vector<8x128xf32>
    %c2_102 = arith.constant 2 : index
    %c0_103 = arith.constant 0 : index
    %c0_104 = arith.constant 0 : index
    %240 = vector.load %arg7[%c2_102, %c0_103, %c0_104] : memref<8x1x128xf32, #tpu.memory_space<vmem>>, vector<1x1x128xf32>
    %241 = vector.shape_cast %240 : vector<1x1x128xf32> to vector<1x128xf32>
    %242 = vector.broadcast %241 : vector<1x128xf32> to vector<8x128xf32>
    %243 = arith.addf %239, %242 : vector<8x128xf32>
    %c2_105 = arith.constant 2 : index
    %c0_106 = arith.constant 0 : index
    %c0_107 = arith.constant 0 : index
    %244 = vector.load %arg13[%c2_105, %c0_106, %c0_107] : memref<8x8x128xf32, #tpu.memory_space<vmem>>, vector<1x8x128xf32>
    %245 = vector.shape_cast %244 : vector<1x8x128xf32> to vector<8x128xf32>
    %246 = vector.shape_cast %243 : vector<8x128xf32> to vector<1x8x128xf32>
    tpu.vector_store %arg13[%c2_105, %c0_106, %c0_107], %246 {strides = array<i32>} : memref<8x8x128xf32, #tpu.memory_space<vmem>>, vector<1x8x128xf32>,
    %c3_108 = arith.constant 3 : index
    %c0_109 = arith.constant 0 : index
    %c0_110 = arith.constant 0 : index
    %247 = vector.load %arg13[%c3_108, %c0_109, %c0_110] : memref<8x8x128xf32, #tpu.memory_space<vmem>>, vector<1x8x128xf32>
    %248 = vector.shape_cast %247 : vector<1x8x128xf32> to vector<8x128xf32>
    %c3_111 = arith.constant 3 : index
    %249 = memref.load %arg8[%c3_111] : memref<8xf32, #tpu.memory_space<smem>>
    %250 = vector.broadcast %249 : f32 to vector<8x128xf32>
    %251 = arith.mulf %248, %250 : vector<8x128xf32>
    %c3_112 = arith.constant 3 : index
    %c0_113 = arith.constant 0 : index
    %c0_114 = arith.constant 0 : index
    %252 = vector.load %arg7[%c3_112, %c0_113, %c0_114] : memref<8x1x128xf32, #tpu.memory_space<vmem>>, vector<1x1x128xf32>
    %253 = vector.shape_cast %252 : vector<1x1x128xf32> to vector<1x128xf32>
    %254 = vector.broadcast %253 : vector<1x128xf32> to vector<8x128xf32>
    %255 = arith.addf %251, %254 : vector<8x128xf32>
    %c3_115 = arith.constant 3 : index
    %c0_116 = arith.constant 0 : index
    %c0_117 = arith.constant 0 : index
    %256 = vector.load %arg13[%c3_115, %c0_116, %c0_117] : memref<8x8x128xf32, #tpu.memory_space<vmem>>, vector<1x8x128xf32>
    %257 = vector.shape_cast %256 : vector<1x8x128xf32> to vector<8x128xf32>
    %258 = vector.shape_cast %255 : vector<8x128xf32> to vector<1x8x128xf32>
    tpu.vector_store %arg13[%c3_115, %c0_116, %c0_117], %258 {strides = array<i32>} : memref<8x8x128xf32, #tpu.memory_space<vmem>>, vector<1x8x128xf32>,
    %c4_118 = arith.constant 4 : index
    %c0_119 = arith.constant 0 : index
    %c0_120 = arith.constant 0 : index
    %259 = vector.load %arg13[%c4_118, %c0_119, %c0_120] : memref<8x8x128xf32, #tpu.memory_space<vmem>>, vector<1x8x128xf32>
    %260 = vector.shape_cast %259 : vector<1x8x128xf32> to vector<8x128xf32>
    %c4_121 = arith.constant 4 : index
    %261 = memref.load %arg8[%c4_121] : memref<8xf32, #tpu.memory_space<smem>>
    %262 = vector.broadcast %261 : f32 to vector<8x128xf32>
    %263 = arith.mulf %260, %262 : vector<8x128xf32>
    %c4_122 = arith.constant 4 : index
    %c0_123 = arith.constant 0 : index
    %c0_124 = arith.constant 0 : index
    %264 = vector.load %arg7[%c4_122, %c0_123, %c0_124] : memref<8x1x128xf32, #tpu.memory_space<vmem>>, vector<1x1x128xf32>
    %265 = vector.shape_cast %264 : vector<1x1x128xf32> to vector<1x128xf32>
    %266 = vector.broadcast %265 : vector<1x128xf32> to vector<8x128xf32>
    %267 = arith.addf %263, %266 : vector<8x128xf32>
    %c4_125 = arith.constant 4 : index
    %c0_126 = arith.constant 0 : index
    %c0_127 = arith.constant 0 : index
    %268 = vector.load %arg13[%c4_125, %c0_126, %c0_127] : memref<8x8x128xf32, #tpu.memory_space<vmem>>, vector<1x8x128xf32>
    %269 = vector.shape_cast %268 : vector<1x8x128xf32> to vector<8x128xf32>
    %270 = vector.shape_cast %267 : vector<8x128xf32> to vector<1x8x128xf32>
    tpu.vector_store %arg13[%c4_125, %c0_126, %c0_127], %270 {strides = array<i32>} : memref<8x8x128xf32, #tpu.memory_space<vmem>>, vector<1x8x128xf32>,
    %c5_128 = arith.constant 5 : index
    %c0_129 = arith.constant 0 : index
    %c0_130 = arith.constant 0 : index
    %271 = vector.load %arg13[%c5_128, %c0_129, %c0_130] : memref<8x8x128xf32, #tpu.memory_space<vmem>>, vector<1x8x128xf32>
    %272 = vector.shape_cast %271 : vector<1x8x128xf32> to vector<8x128xf32>
    %c5_131 = arith.constant 5 : index
    %273 = memref.load %arg8[%c5_131] : memref<8xf32, #tpu.memory_space<smem>>
    %274 = vector.broadcast %273 : f32 to vector<8x128xf32>
    %275 = arith.mulf %272, %274 : vector<8x128xf32>
    %c5_132 = arith.constant 5 : index
    %c0_133 = arith.constant 0 : index
    %c0_134 = arith.constant 0 : index
    %276 = vector.load %arg7[%c5_132, %c0_133, %c0_134] : memref<8x1x128xf32, #tpu.memory_space<vmem>>, vector<1x1x128xf32>
    %277 = vector.shape_cast %276 : vector<1x1x128xf32> to vector<1x128xf32>
    %278 = vector.broadcast %277 : vector<1x128xf32> to vector<8x128xf32>
    %279 = arith.addf %275, %278 : vector<8x128xf32>
    %c5_135 = arith.constant 5 : index
    %c0_136 = arith.constant 0 : index
    %c0_137 = arith.constant 0 : index
    %280 = vector.load %arg13[%c5_135, %c0_136, %c0_137] : memref<8x8x128xf32, #tpu.memory_space<vmem>>, vector<1x8x128xf32>
    %281 = vector.shape_cast %280 : vector<1x8x128xf32> to vector<8x128xf32>
    %282 = vector.shape_cast %279 : vector<8x128xf32> to vector<1x8x128xf32>
    tpu.vector_store %arg13[%c5_135, %c0_136, %c0_137], %282 {strides = array<i32>} : memref<8x8x128xf32, #tpu.memory_space<vmem>>, vector<1x8x128xf32>,
    %c6_138 = arith.constant 6 : index
    %c0_139 = arith.constant 0 : index
    %c0_140 = arith.constant 0 : index
    %283 = vector.load %arg13[%c6_138, %c0_139, %c0_140] : memref<8x8x128xf32, #tpu.memory_space<vmem>>, vector<1x8x128xf32>
    %284 = vector.shape_cast %283 : vector<1x8x128xf32> to vector<8x128xf32>
    %c6_141 = arith.constant 6 : index
    %285 = memref.load %arg8[%c6_141] : memref<8xf32, #tpu.memory_space<smem>>
    %286 = vector.broadcast %285 : f32 to vector<8x128xf32>
    %287 = arith.mulf %284, %286 : vector<8x128xf32>
    %c6_142 = arith.constant 6 : index
    %c0_143 = arith.constant 0 : index
    %c0_144 = arith.constant 0 : index
    %288 = vector.load %arg7[%c6_142, %c0_143, %c0_144] : memref<8x1x128xf32, #tpu.memory_space<vmem>>, vector<1x1x128xf32>
    %289 = vector.shape_cast %288 : vector<1x1x128xf32> to vector<1x128xf32>
    %290 = vector.broadcast %289 : vector<1x128xf32> to vector<8x128xf32>
    %291 = arith.addf %287, %290 : vector<8x128xf32>
    %c6_145 = arith.constant 6 : index
    %c0_146 = arith.constant 0 : index
    %c0_147 = arith.constant 0 : index
    %292 = vector.load %arg13[%c6_145, %c0_146, %c0_147] : memref<8x8x128xf32, #tpu.memory_space<vmem>>, vector<1x8x128xf32>
    %293 = vector.shape_cast %292 : vector<1x8x128xf32> to vector<8x128xf32>
    %294 = vector.shape_cast %291 : vector<8x128xf32> to vector<1x8x128xf32>
    tpu.vector_store %arg13[%c6_145, %c0_146, %c0_147], %294 {strides = array<i32>} : memref<8x8x128xf32, #tpu.memory_space<vmem>>, vector<1x8x128xf32>,
    %c7_148 = arith.constant 7 : index
    %c0_149 = arith.constant 0 : index
    %c0_150 = arith.constant 0 : index
    %295 = vector.load %arg13[%c7_148, %c0_149, %c0_150] : memref<8x8x128xf32, #tpu.memory_space<vmem>>, vector<1x8x128xf32>
    %296 = vector.shape_cast %295 : vector<1x8x128xf32> to vector<8x128xf32>
    %c7_151 = arith.constant 7 : index
    %297 = memref.load %arg8[%c7_151] : memref<8xf32, #tpu.memory_space<smem>>
    %298 = vector.broadcast %297 : f32 to vector<8x128xf32>
    %299 = arith.mulf %296, %298 : vector<8x128xf32>
    %c7_152 = arith.constant 7 : index
    %c0_153 = arith.constant 0 : index
    %c0_154 = arith.constant 0 : index
    %300 = vector.load %arg7[%c7_152, %c0_153, %c0_154] : memref<8x1x128xf32, #tpu.memory_space<vmem>>, vector<1x1x128xf32>
    %301 = vector.shape_cast %300 : vector<1x1x128xf32> to vector<1x128xf32>
    %302 = vector.broadcast %301 : vector<1x128xf32> to vector<8x128xf32>
    %303 = arith.addf %299, %302 : vector<8x128xf32>
    %c7_155 = arith.constant 7 : index
    %c0_156 = arith.constant 0 : index
    %c0_157 = arith.constant 0 : index
    %304 = vector.load %arg13[%c7_155, %c0_156, %c0_157] : memref<8x8x128xf32, #tpu.memory_space<vmem>>, vector<1x8x128xf32>
    %305 = vector.shape_cast %304 : vector<1x8x128xf32> to vector<8x128xf32>
    %306 = vector.shape_cast %303 : vector<8x128xf32> to vector<1x8x128xf32>
    tpu.vector_store %arg13[%c7_155, %c0_156, %c0_157], %306 {strides = array<i32>} : memref<8x8x128xf32, #tpu.memory_space<vmem>>, vector<1x8x128xf32>,
    %c0_158 = arith.constant 0 : index
    %c0_159 = arith.constant 0 : index
    %307 = vector.load %arg6[%c0_158, %c0_159] : memref<32x128xbf16, #tpu.memory_space<vmem>>, vector<32x128xbf16>
    %c0_160 = arith.constant 0 : index
    %c0_161 = arith.constant 0 : index
    %c0_162 = arith.constant 0 : index
    %308 = vector.load %arg13[%c0_160, %c0_161, %c0_162] : memref<8x8x128xf32, #tpu.memory_space<vmem>>, vector<1x8x128xf32>
    %309 = vector.shape_cast %308 : vector<1x8x128xf32> to vector<8x128xf32>
    %310 = arith.truncf %200 : vector<8x32xf32> to vector<8x32xbf16>
    %cst_163 = arith.constant dense<0.000000e+00> : vector<8x128xf32>
    %311 = tpu.matmul %310, %307, %cst_163 {dimension_numbers = #tpu.dot_dimension_numbers<[1], [0], [0], [1], [0, 0, 1, 1], [], []>} : vector<8x32xbf16>, vector<32x128xbf16>, vector<8x128xf32> -> vector<8x128xf32>
    %312 = arith.addf %309, %311 : vector<8x128xf32>
    %313 = vector.extract_strided_slice %312 {offsets = [0, 0], sizes = [8, 96], strides = [1, 1]} : vector<8x128xf32> to vector<8x96xf32>
    %314 = arith.negf %313 : vector<8x96xf32>
    %315 = math.exp %314 : vector<8x96xf32>
    %cst_164 = arith.constant 1.000000e+00 : f32
    %316 = vector.broadcast %cst_164 : f32 to vector<8x96xf32>
    %317 = arith.addf %316, %315 : vector<8x96xf32>
    %318 = arith.divf %316, %317 : vector<8x96xf32>
    %319 = vector.extract_strided_slice %318 {offsets = [0, 0], sizes = [8, 32], strides = [1, 1]} : vector<8x96xf32> to vector<8x32xf32>
    %320 = vector.extract_strided_slice %318 {offsets = [0, 32], sizes = [8, 32], strides = [1, 1]} : vector<8x96xf32> to vector<8x32xf32>
    %321 = vector.extract_strided_slice %318 {offsets = [0, 64], sizes = [8, 32], strides = [1, 1]} : vector<8x96xf32> to vector<8x32xf32>
    %322 = vector.extract_strided_slice %312 {offsets = [0, 96], sizes = [8, 32], strides = [1, 1]} : vector<8x128xf32> to vector<8x32xf32>
    %323 = math.tanh %322 : vector<8x32xf32>
    %324 = arith.mulf %320, %198 : vector<8x32xf32>
    %325 = arith.mulf %319, %323 : vector<8x32xf32>
    %326 = arith.addf %324, %325 : vector<8x32xf32>
    %327 = math.tanh %326 : vector<8x32xf32>
    %328 = arith.mulf %321, %327 : vector<8x32xf32>
    %c1_165 = arith.constant 1 : index
    %c0_166 = arith.constant 0 : index
    %c0_167 = arith.constant 0 : index
    %329 = vector.load %arg13[%c1_165, %c0_166, %c0_167] : memref<8x8x128xf32, #tpu.memory_space<vmem>>, vector<1x8x128xf32>
    %330 = vector.shape_cast %329 : vector<1x8x128xf32> to vector<8x128xf32>
    %331 = arith.truncf %328 : vector<8x32xf32> to vector<8x32xbf16>
    %cst_168 = arith.constant dense<0.000000e+00> : vector<8x128xf32>
    %332 = tpu.matmul %331, %307, %cst_168 {dimension_numbers = #tpu.dot_dimension_numbers<[1], [0], [0], [1], [0, 0, 1, 1], [], []>} : vector<8x32xbf16>, vector<32x128xbf16>, vector<8x128xf32> -> vector<8x128xf32>
    %333 = arith.addf %330, %332 : vector<8x128xf32>
    %334 = vector.extract_strided_slice %333 {offsets = [0, 0], sizes = [8, 96], strides = [1, 1]} : vector<8x128xf32> to vector<8x96xf32>
    %335 = arith.negf %334 : vector<8x96xf32>
    %336 = math.exp %335 : vector<8x96xf32>
    %cst_169 = arith.constant 1.000000e+00 : f32
    %337 = vector.broadcast %cst_169 : f32 to vector<8x96xf32>
    %338 = arith.addf %337, %336 : vector<8x96xf32>
    %339 = arith.divf %337, %338 : vector<8x96xf32>
    %340 = vector.extract_strided_slice %339 {offsets = [0, 0], sizes = [8, 32], strides = [1, 1]} : vector<8x96xf32> to vector<8x32xf32>
    %341 = vector.extract_strided_slice %339 {offsets = [0, 32], sizes = [8, 32], strides = [1, 1]} : vector<8x96xf32> to vector<8x32xf32>
    %342 = vector.extract_strided_slice %339 {offsets = [0, 64], sizes = [8, 32], strides = [1, 1]} : vector<8x96xf32> to vector<8x32xf32>
    %343 = vector.extract_strided_slice %333 {offsets = [0, 96], sizes = [8, 32], strides = [1, 1]} : vector<8x128xf32> to vector<8x32xf32>
    %344 = math.tanh %343 : vector<8x32xf32>
    %345 = arith.mulf %341, %326 : vector<8x32xf32>
    %346 = arith.mulf %340, %344 : vector<8x32xf32>
    %347 = arith.addf %345, %346 : vector<8x32xf32>
    %348 = math.tanh %347 : vector<8x32xf32>
    %349 = arith.mulf %342, %348 : vector<8x32xf32>
    %c2_170 = arith.constant 2 : index
    %c0_171 = arith.constant 0 : index
    %c0_172 = arith.constant 0 : index
    %350 = vector.load %arg13[%c2_170, %c0_171, %c0_172] : memref<8x8x128xf32, #tpu.memory_space<vmem>>, vector<1x8x128xf32>
    %351 = vector.shape_cast %350 : vector<1x8x128xf32> to vector<8x128xf32>
    %352 = arith.truncf %349 : vector<8x32xf32> to vector<8x32xbf16>
    %cst_173 = arith.constant dense<0.000000e+00> : vector<8x128xf32>
    %353 = tpu.matmul %352, %307, %cst_173 {dimension_numbers = #tpu.dot_dimension_numbers<[1], [0], [0], [1], [0, 0, 1, 1], [], []>} : vector<8x32xbf16>, vector<32x128xbf16>, vector<8x128xf32> -> vector<8x128xf32>
    %354 = arith.addf %351, %353 : vector<8x128xf32>
    %355 = vector.extract_strided_slice %354 {offsets = [0, 0], sizes = [8, 96], strides = [1, 1]} : vector<8x128xf32> to vector<8x96xf32>
    %356 = arith.negf %355 : vector<8x96xf32>
    %357 = math.exp %356 : vector<8x96xf32>
    %cst_174 = arith.constant 1.000000e+00 : f32
    %358 = vector.broadcast %cst_174 : f32 to vector<8x96xf32>
    %359 = arith.addf %358, %357 : vector<8x96xf32>
    %360 = arith.divf %358, %359 : vector<8x96xf32>
    %361 = vector.extract_strided_slice %360 {offsets = [0, 0], sizes = [8, 32], strides = [1, 1]} : vector<8x96xf32> to vector<8x32xf32>
    %362 = vector.extract_strided_slice %360 {offsets = [0, 32], sizes = [8, 32], strides = [1, 1]} : vector<8x96xf32> to vector<8x32xf32>
    %363 = vector.extract_strided_slice %360 {offsets = [0, 64], sizes = [8, 32], strides = [1, 1]} : vector<8x96xf32> to vector<8x32xf32>
    %364 = vector.extract_strided_slice %354 {offsets = [0, 96], sizes = [8, 32], strides = [1, 1]} : vector<8x128xf32> to vector<8x32xf32>
    %365 = math.tanh %364 : vector<8x32xf32>
    %366 = arith.mulf %362, %347 : vector<8x32xf32>
    %367 = arith.mulf %361, %365 : vector<8x32xf32>
    %368 = arith.addf %366, %367 : vector<8x32xf32>
    %369 = math.tanh %368 : vector<8x32xf32>
    %370 = arith.mulf %363, %369 : vector<8x32xf32>
    %c3_175 = arith.constant 3 : index
    %c0_176 = arith.constant 0 : index
    %c0_177 = arith.constant 0 : index
    %371 = vector.load %arg13[%c3_175, %c0_176, %c0_177] : memref<8x8x128xf32, #tpu.memory_space<vmem>>, vector<1x8x128xf32>
    %372 = vector.shape_cast %371 : vector<1x8x128xf32> to vector<8x128xf32>
    %373 = arith.truncf %370 : vector<8x32xf32> to vector<8x32xbf16>
    %cst_178 = arith.constant dense<0.000000e+00> : vector<8x128xf32>
    %374 = tpu.matmul %373, %307, %cst_178 {dimension_numbers = #tpu.dot_dimension_numbers<[1], [0], [0], [1], [0, 0, 1, 1], [], []>} : vector<8x32xbf16>, vector<32x128xbf16>, vector<8x128xf32> -> vector<8x128xf32>
    %375 = arith.addf %372, %374 : vector<8x128xf32>
    %376 = vector.extract_strided_slice %375 {offsets = [0, 0], sizes = [8, 96], strides = [1, 1]} : vector<8x128xf32> to vector<8x96xf32>
    %377 = arith.negf %376 : vector<8x96xf32>
    %378 = math.exp %377 : vector<8x96xf32>
    %cst_179 = arith.constant 1.000000e+00 : f32
    %379 = vector.broadcast %cst_179 : f32 to vector<8x96xf32>
    %380 = arith.addf %379, %378 : vector<8x96xf32>
    %381 = arith.divf %379, %380 : vector<8x96xf32>
    %382 = vector.extract_strided_slice %381 {offsets = [0, 0], sizes = [8, 32], strides = [1, 1]} : vector<8x96xf32> to vector<8x32xf32>
    %383 = vector.extract_strided_slice %381 {offsets = [0, 32], sizes = [8, 32], strides = [1, 1]} : vector<8x96xf32> to vector<8x32xf32>
    %384 = vector.extract_strided_slice %381 {offsets = [0, 64], sizes = [8, 32], strides = [1, 1]} : vector<8x96xf32> to vector<8x32xf32>
    %385 = vector.extract_strided_slice %375 {offsets = [0, 96], sizes = [8, 32], strides = [1, 1]} : vector<8x128xf32> to vector<8x32xf32>
    %386 = math.tanh %385 : vector<8x32xf32>
    %387 = arith.mulf %383, %368 : vector<8x32xf32>
    %388 = arith.mulf %382, %386 : vector<8x32xf32>
    %389 = arith.addf %387, %388 : vector<8x32xf32>
    %390 = math.tanh %389 : vector<8x32xf32>
    %391 = arith.mulf %384, %390 : vector<8x32xf32>
    %c4_180 = arith.constant 4 : index
    %c0_181 = arith.constant 0 : index
    %c0_182 = arith.constant 0 : index
    %392 = vector.load %arg13[%c4_180, %c0_181, %c0_182] : memref<8x8x128xf32, #tpu.memory_space<vmem>>, vector<1x8x128xf32>
    %393 = vector.shape_cast %392 : vector<1x8x128xf32> to vector<8x128xf32>
    %394 = arith.truncf %391 : vector<8x32xf32> to vector<8x32xbf16>
    %cst_183 = arith.constant dense<0.000000e+00> : vector<8x128xf32>
    %395 = tpu.matmul %394, %307, %cst_183 {dimension_numbers = #tpu.dot_dimension_numbers<[1], [0], [0], [1], [0, 0, 1, 1], [], []>} : vector<8x32xbf16>, vector<32x128xbf16>, vector<8x128xf32> -> vector<8x128xf32>
    %396 = arith.addf %393, %395 : vector<8x128xf32>
    %397 = vector.extract_strided_slice %396 {offsets = [0, 0], sizes = [8, 96], strides = [1, 1]} : vector<8x128xf32> to vector<8x96xf32>
    %398 = arith.negf %397 : vector<8x96xf32>
    %399 = math.exp %398 : vector<8x96xf32>
    %cst_184 = arith.constant 1.000000e+00 : f32
    %400 = vector.broadcast %cst_184 : f32 to vector<8x96xf32>
    %401 = arith.addf %400, %399 : vector<8x96xf32>
    %402 = arith.divf %400, %401 : vector<8x96xf32>
    %403 = vector.extract_strided_slice %402 {offsets = [0, 0], sizes = [8, 32], strides = [1, 1]} : vector<8x96xf32> to vector<8x32xf32>
    %404 = vector.extract_strided_slice %402 {offsets = [0, 32], sizes = [8, 32], strides = [1, 1]} : vector<8x96xf32> to vector<8x32xf32>
    %405 = vector.extract_strided_slice %402 {offsets = [0, 64], sizes = [8, 32], strides = [1, 1]} : vector<8x96xf32> to vector<8x32xf32>
    %406 = vector.extract_strided_slice %396 {offsets = [0, 96], sizes = [8, 32], strides = [1, 1]} : vector<8x128xf32> to vector<8x32xf32>
    %407 = math.tanh %406 : vector<8x32xf32>
    %408 = arith.mulf %404, %389 : vector<8x32xf32>
    %409 = arith.mulf %403, %407 : vector<8x32xf32>
    %410 = arith.addf %408, %409 : vector<8x32xf32>
    %411 = math.tanh %410 : vector<8x32xf32>
    %412 = arith.mulf %405, %411 : vector<8x32xf32>
    %c5_185 = arith.constant 5 : index
    %c0_186 = arith.constant 0 : index
    %c0_187 = arith.constant 0 : index
    %413 = vector.load %arg13[%c5_185, %c0_186, %c0_187] : memref<8x8x128xf32, #tpu.memory_space<vmem>>, vector<1x8x128xf32>
    %414 = vector.shape_cast %413 : vector<1x8x128xf32> to vector<8x128xf32>
    %415 = arith.truncf %412 : vector<8x32xf32> to vector<8x32xbf16>
    %cst_188 = arith.constant dense<0.000000e+00> : vector<8x128xf32>
    %416 = tpu.matmul %415, %307, %cst_188 {dimension_numbers = #tpu.dot_dimension_numbers<[1], [0], [0], [1], [0, 0, 1, 1], [], []>} : vector<8x32xbf16>, vector<32x128xbf16>, vector<8x128xf32> -> vector<8x128xf32>
    %417 = arith.addf %414, %416 : vector<8x128xf32>
    %418 = vector.extract_strided_slice %417 {offsets = [0, 0], sizes = [8, 96], strides = [1, 1]} : vector<8x128xf32> to vector<8x96xf32>
    %419 = arith.negf %418 : vector<8x96xf32>
    %420 = math.exp %419 : vector<8x96xf32>
    %cst_189 = arith.constant 1.000000e+00 : f32
    %421 = vector.broadcast %cst_189 : f32 to vector<8x96xf32>
    %422 = arith.addf %421, %420 : vector<8x96xf32>
    %423 = arith.divf %421, %422 : vector<8x96xf32>
    %424 = vector.extract_strided_slice %423 {offsets = [0, 0], sizes = [8, 32], strides = [1, 1]} : vector<8x96xf32> to vector<8x32xf32>
    %425 = vector.extract_strided_slice %423 {offsets = [0, 32], sizes = [8, 32], strides = [1, 1]} : vector<8x96xf32> to vector<8x32xf32>
    %426 = vector.extract_strided_slice %423 {offsets = [0, 64], sizes = [8, 32], strides = [1, 1]} : vector<8x96xf32> to vector<8x32xf32>
    %427 = vector.extract_strided_slice %417 {offsets = [0, 96], sizes = [8, 32], strides = [1, 1]} : vector<8x128xf32> to vector<8x32xf32>
    %428 = math.tanh %427 : vector<8x32xf32>
    %429 = arith.mulf %425, %410 : vector<8x32xf32>
    %430 = arith.mulf %424, %428 : vector<8x32xf32>
    %431 = arith.addf %429, %430 : vector<8x32xf32>
    %432 = math.tanh %431 : vector<8x32xf32>
    %433 = arith.mulf %426, %432 : vector<8x32xf32>
    %c6_190 = arith.constant 6 : index
    %c0_191 = arith.constant 0 : index
    %c0_192 = arith.constant 0 : index
    %434 = vector.load %arg13[%c6_190, %c0_191, %c0_192] : memref<8x8x128xf32, #tpu.memory_space<vmem>>, vector<1x8x128xf32>
    %435 = vector.shape_cast %434 : vector<1x8x128xf32> to vector<8x128xf32>
    %436 = arith.truncf %433 : vector<8x32xf32> to vector<8x32xbf16>
    %cst_193 = arith.constant dense<0.000000e+00> : vector<8x128xf32>
    %437 = tpu.matmul %436, %307, %cst_193 {dimension_numbers = #tpu.dot_dimension_numbers<[1], [0], [0], [1], [0, 0, 1, 1], [], []>} : vector<8x32xbf16>, vector<32x128xbf16>, vector<8x128xf32> -> vector<8x128xf32>
    %438 = arith.addf %435, %437 : vector<8x128xf32>
    %439 = vector.extract_strided_slice %438 {offsets = [0, 0], sizes = [8, 96], strides = [1, 1]} : vector<8x128xf32> to vector<8x96xf32>
    %440 = arith.negf %439 : vector<8x96xf32>
    %441 = math.exp %440 : vector<8x96xf32>
    %cst_194 = arith.constant 1.000000e+00 : f32
    %442 = vector.broadcast %cst_194 : f32 to vector<8x96xf32>
    %443 = arith.addf %442, %441 : vector<8x96xf32>
    %444 = arith.divf %442, %443 : vector<8x96xf32>
    %445 = vector.extract_strided_slice %444 {offsets = [0, 0], sizes = [8, 32], strides = [1, 1]} : vector<8x96xf32> to vector<8x32xf32>
    %446 = vector.extract_strided_slice %444 {offsets = [0, 32], sizes = [8, 32], strides = [1, 1]} : vector<8x96xf32> to vector<8x32xf32>
    %447 = vector.extract_strided_slice %444 {offsets = [0, 64], sizes = [8, 32], strides = [1, 1]} : vector<8x96xf32> to vector<8x32xf32>
    %448 = vector.extract_strided_slice %438 {offsets = [0, 96], sizes = [8, 32], strides = [1, 1]} : vector<8x128xf32> to vector<8x32xf32>
    %449 = math.tanh %448 : vector<8x32xf32>
    %450 = arith.mulf %446, %431 : vector<8x32xf32>
    %451 = arith.mulf %445, %449 : vector<8x32xf32>
    %452 = arith.addf %450, %451 : vector<8x32xf32>
    %453 = math.tanh %452 : vector<8x32xf32>
    %454 = arith.mulf %447, %453 : vector<8x32xf32>
    %c7_195 = arith.constant 7 : index
    %c0_196 = arith.constant 0 : index
    %c0_197 = arith.constant 0 : index
    %455 = vector.load %arg13[%c7_195, %c0_196, %c0_197] : memref<8x8x128xf32, #tpu.memory_space<vmem>>, vector<1x8x128xf32>
    %456 = vector.shape_cast %455 : vector<1x8x128xf32> to vector<8x128xf32>
    %457 = arith.truncf %454 : vector<8x32xf32> to vector<8x32xbf16>
    %cst_198 = arith.constant dense<0.000000e+00> : vector<8x128xf32>
    %458 = tpu.matmul %457, %307, %cst_198 {dimension_numbers = #tpu.dot_dimension_numbers<[1], [0], [0], [1], [0, 0, 1, 1], [], []>} : vector<8x32xbf16>, vector<32x128xbf16>, vector<8x128xf32> -> vector<8x128xf32>
    %459 = arith.addf %456, %458 : vector<8x128xf32>
    %460 = vector.extract_strided_slice %459 {offsets = [0, 0], sizes = [8, 96], strides = [1, 1]} : vector<8x128xf32> to vector<8x96xf32>
    %461 = arith.negf %460 : vector<8x96xf32>
    %462 = math.exp %461 : vector<8x96xf32>
    %cst_199 = arith.constant 1.000000e+00 : f32
    %463 = vector.broadcast %cst_199 : f32 to vector<8x96xf32>
    %464 = arith.addf %463, %462 : vector<8x96xf32>
    %465 = arith.divf %463, %464 : vector<8x96xf32>
    %466 = vector.extract_strided_slice %465 {offsets = [0, 0], sizes = [8, 32], strides = [1, 1]} : vector<8x96xf32> to vector<8x32xf32>
    %467 = vector.extract_strided_slice %465 {offsets = [0, 32], sizes = [8, 32], strides = [1, 1]} : vector<8x96xf32> to vector<8x32xf32>
    %468 = vector.extract_strided_slice %465 {offsets = [0, 64], sizes = [8, 32], strides = [1, 1]} : vector<8x96xf32> to vector<8x32xf32>
    %469 = vector.extract_strided_slice %459 {offsets = [0, 96], sizes = [8, 32], strides = [1, 1]} : vector<8x128xf32> to vector<8x32xf32>
    %470 = math.tanh %469 : vector<8x32xf32>
    %471 = arith.mulf %467, %452 : vector<8x32xf32>
    %472 = arith.mulf %466, %470 : vector<8x32xf32>
    %473 = arith.addf %471, %472 : vector<8x32xf32>
    %474 = math.tanh %473 : vector<8x32xf32>
    %475 = arith.mulf %468, %474 : vector<8x32xf32>
    %c0_200 = arith.constant 0 : index
    %c0_201 = arith.constant 0 : index
    %476 = vector.load %arg9[%c0_200, %c0_201] : memref<8x32xf32, #tpu.memory_space<vmem>>, vector<8x32xf32>
    %477 = tpu.transpose %475, [1, 0] : vector<8x32xf32> -> vector<32x8xf32>
    %cst_202 = arith.constant dense<0.000000e+00> : vector<8x8xf32>
    %478 = tpu.matmul %476, %477, %cst_202 {dimension_numbers = #tpu.dot_dimension_numbers<[1], [0], [0], [1], [0, 0, 1, 1], [], []>} : vector<8x32xf32>, vector<32x8xf32>, vector<8x8xf32> -> vector<8x8xf32>
    %c0_203 = arith.constant 0 : index
    %479 = memref.load %arg10[%c0_203] : memref<1xf32, #tpu.memory_space<smem>>
    %480 = vector.broadcast %479 : f32 to vector<8x8xf32>
    %481 = arith.addf %478, %480 : vector<8x8xf32>
    %c0_204 = arith.constant 0 : index
    %c0_205 = arith.constant 0 : index
    %482 = vector.load %arg11[%c0_204, %c0_205] : memref<8x8xf32, #tpu.memory_space<vmem>>, vector<8x8xf32>
    tpu.vector_store %arg11[%c0_204, %c0_205], %481 {strides = array<i32>} : memref<8x8xf32, #tpu.memory_space<vmem>>, vector<8x8xf32>,
    return
  }
  func.func @transform_0(%arg0: i32) -> (i32, i32, i32) {
    %c0_i32 = arith.constant 0 : i32
    %c0_i32_0 = arith.constant 0 : i32
    %c0_i32_1 = arith.constant 0 : i32
    return %c0_i32, %arg0, %c0_i32_0 : i32, i32, i32
  }
  func.func @transform_1(%arg0: i32) -> (i32, i32) {
    %c0_i32 = arith.constant 0 : i32
    %c0_i32_0 = arith.constant 0 : i32
    %c0_i32_1 = arith.constant 0 : i32
    return %c0_i32, %c0_i32_0 : i32, i32
  }
  func.func @transform_2(%arg0: i32) -> (i32, i32) {
    %c0_i32 = arith.constant 0 : i32
    %c0_i32_0 = arith.constant 0 : i32
    %c0_i32_1 = arith.constant 0 : i32
    return %c0_i32, %c0_i32_0 : i32, i32
  }
  func.func @transform_3(%arg0: i32) -> (i32, i32) {
    %c0_i32 = arith.constant 0 : i32
    %c0_i32_0 = arith.constant 0 : i32
    %c0_i32_1 = arith.constant 0 : i32
    return %c0_i32, %c0_i32_0 : i32, i32
  }
  func.func @transform_4(%arg0: i32) -> (i32, i32) {
    %c0_i32 = arith.constant 0 : i32
    %c0_i32_0 = arith.constant 0 : i32
    %c0_i32_1 = arith.constant 0 : i32
    return %c0_i32, %c0_i32_0 : i32, i32
  }
  func.func @transform_5(%arg0: i32) -> (i32, i32) {
    %c0_i32 = arith.constant 0 : i32
    %c0_i32_0 = arith.constant 0 : i32
    %c0_i32_1 = arith.constant 0 : i32
    return %c0_i32, %c0_i32_0 : i32, i32
  }
  func.func @transform_6(%arg0: i32) -> (i32, i32, i32) {
    %c0_i32 = arith.constant 0 : i32
    %c0_i32_0 = arith.constant 0 : i32
    %c0_i32_1 = arith.constant 0 : i32
    %c0_i32_2 = arith.constant 0 : i32
    return %c0_i32, %c0_i32_0, %c0_i32_1 : i32, i32, i32
  }
  func.func @transform_7(%arg0: i32) -> i32 {
    %c0_i32 = arith.constant 0 : i32
    %c0_i32_0 = arith.constant 0 : i32
    return %c0_i32 : i32
  }
  func.func @transform_8(%arg0: i32) -> (i32, i32) {
    %c0_i32 = arith.constant 0 : i32
    %c0_i32_0 = arith.constant 0 : i32
    %c0_i32_1 = arith.constant 0 : i32
    return %c0_i32, %c0_i32_0 : i32, i32
  }
  func.func @transform_9(%arg0: i32) -> i32 {
    %c0_i32 = arith.constant 0 : i32
    %c0_i32_0 = arith.constant 0 : i32
    return %c0_i32 : i32
  }
  func.func @transform_10(%arg0: i32) -> (i32, i32) {
    %c0_i32 = arith.constant 0 : i32
    %c0_i32_0 = arith.constant 0 : i32
    return %c0_i32, %arg0 : i32, i32
  }
}

</mosaic_0001>

<bundles_post_ra>
// kernel: tpu_custom_call.1
= control target key start
LH: loop header
LB: loop body
LE: loop exit
PB: predicated region body
PF: predicated region fallthrough
CT: control target
= control target key end

     0   :  { %16 = vsyncpa [#allocation6], 0  ;;  %s2856_s0 = inlined_call_operand.hbm [shape: f32[8,8,16], index: 0, kind: input, shape index: {}]   ;;  %s2857_s1 = inlined_call_operand.hbm [shape: bf16[16,128], index: 1, kind: input, shape index: {}]   ;;  %s2858_s2 = inlined_call_operand.hbm [shape: bf16[32,128], index: 2, kind: input, shape index: {}]   ;;  %s2859_s3 = inlined_call_operand.hbm [shape: f32[1,128], index: 3, kind: input, shape index: {}]   ;;  %s2860_s4 = inlined_call_operand.hbm [shape: bf16[32,128], index: 4, kind: input, shape index: {}]   ;;  %s2861_s5 = inlined_call_operand.hbm [shape: bf16[32,128], index: 5, kind: input, shape index: {}]   ;;  %s2862_s6 = inlined_call_operand.vmem [shape: f32[8,1,128], index: 6, kind: input, shape index: {}]   ;;  %s2863_s7 = inlined_call_operand.hbm [shape: f32[8], index: 7, kind: input, shape index: {}]   ;;  %s2864_s8 = inlined_call_operand.vmem [shape: f32[8,32], index: 8, kind: input, shape index: {}]   ;;  %s2865_s9 = inlined_call_operand.<no memory space> [shape: f32[1], index: 9, kind: input, shape index: {}]   ;;  %s2866_s10 = inlined_call_operand.hbm [shape: f32[8,8], index: 10, kind: output, shape index: {}]  }
   0x1   :  { %17 = vsyncpa [#allocation10], 0 }
   0x2   :  { %18 = vsyncpa [#allocation13], 0 }
   0x3   :  { %19 = vsyncpa [#allocation16], 0 }
   0x4   :  { %20 = vsyncpa [#allocation8], 0 }
   0x5   :  { %21 = vsyncpa [#allocation7], 0  ;;  %s2417_s13 = smov [#allocation9]  }
   0x6   :  { %s39_s14 = sshll.u32 %s2417_s13, 4  ;;  %s40_s14 = int_to_ptr.vmem [resolvable:$true] %s39_s14 }
   0x7   :  { %s2265_s15 = scalar_lea.vmem %s40_s14, 128  ;;  %p2270_p1 = scmp.lt.s32.totalorder %s40_s14, %s40_s14 }
   0x8   :  { %p2266_p0 = scmp.ne.s32.totalorder %s40_s14, %s2265_s15  ;;  %p2271_p2 = scmp.lt.s32.totalorder %s2265_s15, %s2265_s15 }
   0xa   :  { %p2272_p3 = por %p2271_p2, %p2270_p1 }
   0xc   :  { %p2273_p4 = pnand %p2272_p3, %p2266_p0 }
   0xe   :  { %2276 = shalt.err (!%p2273_p4)
}
   0xf   :  { %s2418_s16 = smov 64   ;;  %s2419_s17 = smov 4  }
  0x10   :  { %45 = dma.hbm_to_vmem [thread:$0]  %s2857_s1, 128, %s40_s14, [#allocation10], %s2418_s16, %s2418_s16, %s2419_s17  }
  0x11   :  { %s2420_s20 = smov [#allocation12]   ;;  %s2421_s22 = smov [#allocation5]  }
  0x12   :  { %s64_s21 = sshll.u32 %s2420_s20, 4  ;;  %s27_s23 = sshll.u32 %s2421_s22, 4  ;;  %s65_s21 = int_to_ptr.vmem [resolvable:$true] %s64_s21  ;;  %s28_s23 = int_to_ptr.vmem [resolvable:$true] %s27_s23 }
  0x13   :  { %s2285_s24 = scalar_lea.vmem %s65_s21, 16  ;;  %s2289_s25 = scalar_lea.vmem %s65_s21, 32 }
  0x14   :  { %p2286_p5 = scmp.ne.s32.totalorder %s65_s21, %s2285_s24  ;;  %p2290_p6 = scmp.lt.s32.totalorder %s65_s21, %s65_s21 }
  0x15   :  { %p2291_p7 = scmp.lt.s32.totalorder %s2289_s25, %s2285_s24 }
  0x17   :  { %p2292_p8 = por %p2291_p7, %p2290_p6 }
  0x19   :  { %p2293_p9 = pnand %p2292_p8, %p2286_p5 }
  0x1b   :  { %2296 = shalt.err (!%p2293_p9)
}
  0x1c   :  { %67 = dma.hbm_to_vmem [thread:$0]  %s2859_s3, 16, %s65_s21, [#allocation13]  }
  0x1d   :  { %s2305_s28 = scalar_lea.vmem %s28_s23, 1024  ;;  %p2310_p11 = scmp.lt.s32.totalorder %s28_s23, %s28_s23 }
  0x1e   :  { %p2306_p10 = scmp.ne.s32.totalorder %s28_s23, %s2305_s28  ;;  %p2311_p12 = scmp.lt.s32.totalorder %s2305_s28, %s2305_s28 }
  0x20   :  { %p2312_p13 = por %p2311_p12, %p2310_p11 }
  0x22   :  { %p2313_p0 = pnand %p2312_p13, %p2306_p10 }
  0x24   :  { %2316 = shalt.err (!%p2313_p0)
}
  0x25   :  { %s2422_s1 = smov 128   ;;  %s2423_s29 = smov 8  }
  0x26   :  { %33 = dma.hbm_to_vmem [thread:$0]  %s2856_s0, 1024, %s28_s23, [#allocation6], %s2422_s1, %s2422_s1, %s2423_s29  }
  0x27   :  { %s2424_s12 = smov [#allocation11]   ;;  %s2425_s14 = smov [#allocation14]  }
  0x28   :  { %s51_s13 = sshll.u32 %s2424_s12, 4  ;;  %s73_s15 = sshll.u32 %s2425_s14, 4  ;;  %s52_s13 = int_to_ptr.vmem [resolvable:$true] %s51_s13  ;;  %s74_s15 = int_to_ptr.vmem [resolvable:$true] %s73_s15 }
  0x29   :  { %s2325_s3 = scalar_lea.vmem %s52_s13, 256  ;;  %p2330_p2 = scmp.lt.s32.totalorder %s52_s13, %s52_s13 }
  0x2a   :  { %p2326_p1 = scmp.ne.s32.totalorder %s52_s13, %s2325_s3  ;;  %p2331_p3 = scmp.lt.s32.totalorder %s2325_s3, %s2325_s3 }
  0x2c   :  { %p2332_p4 = por %p2331_p3, %p2330_p2 }
  0x2e   :  { %p2333_p5 = pnand %p2332_p4, %p2326_p1 }
  0x30   :  { %2336 = shalt.err (!%p2333_p5)
}
  0x31   :  { %57 = dma.hbm_to_vmem [thread:$0]  %s2858_s2, 256, %s52_s13, [#allocation10], %s2418_s16, %s2418_s16, %s2419_s17  }
  0x32   :  { %s2345_s0 = scalar_lea.vmem %s74_s15, 256  ;;  %p2350_p7 = scmp.lt.s32.totalorder %s74_s15, %s74_s15 }
  0x33   :  { %p2346_p6 = scmp.ne.s32.totalorder %s74_s15, %s2345_s0  ;;  %p2351_p8 = scmp.lt.s32.totalorder %s2345_s0, %s2345_s0 }
  0x35   :  { %p2352_p9 = por %p2351_p8, %p2350_p7 }
  0x37   :  { %p2353_p10 = pnand %p2352_p9, %p2346_p6 }
  0x39   :  { %2356 = shalt.err (!%p2353_p10)
}
  0x3a   :  { %79 = dma.hbm_to_vmem [thread:$0]  %s2860_s4, 256, %s74_s15, [#allocation13], %s2418_s16, %s2418_s16, %s2419_s17  }
  0x3b   :  { %s2426_s22 = smov [#allocation15]  }
  0x3c   :  { %s85_s23 = sshll.u32 %s2426_s22, 4  ;;  %s86_s23 = int_to_ptr.vmem [resolvable:$true] %s85_s23 }
  0x3d   :  { %s2365_s24 = scalar_lea.vmem %s86_s23, 256  ;;  %p2370_p12 = scmp.lt.s32.totalorder %s86_s23, %s86_s23 }
  0x3e   :  { %p2366_p11 = scmp.ne.s32.totalorder %s86_s23, %s2365_s24  ;;  %p2371_p13 = scmp.lt.s32.totalorder %s2365_s24, %s2365_s24 }
  0x40   :  { %p2372_p0 = por %p2371_p13, %p2370_p12 }
  0x42   :  { %p2373_p1 = pnand %p2372_p0, %p2366_p11 }
  0x44   :  { %2376 = shalt.err (!%p2373_p1)
}
  0x45   :  { %91 = dma.hbm_to_vmem [thread:$0]  %s2861_s5, 256, %s86_s23, [#allocation16], %s2418_s16, %s2418_s16, %s2419_s17  }
  0x46   :  { %s2427_s26 = smov [#allocation17]  }
  0x47   :  { %101 = dma.hbm_to_smem %s2863_s7, 16, %s2427_s26, [#allocation8]  }
  0x48   :  { %2405 = dma.done.wait [#allocation6], 1024  }
  0x49   :  { %2406 = vsyncadd [#allocation6], 4294966272 }
  0x4a   :  { %2407 = dma.done.wait [#allocation10], 384  }
  0x4b   :  { %2408 = vsyncadd [#allocation10], 4294966912 }
  0x4c   :  { %2409 = dma.done.wait [#allocation13], 272  }
  0x4d   :  { %2410 = vsyncadd [#allocation13], 4294967024 }
  0x4e   :  { %2411 = dma.done.wait [#allocation16], 256  }
  0x4f   :  { %2412 = vsyncadd [#allocation16], 4294967040 }
  0x50   :  { %2413 = dma.done.wait [#allocation8], 16  }
  0x51   :  { %2414 = vsyncadd [#allocation8], 4294967280 }
  0x52   :  { %127 = sfence }
  0x53   :  { %v2122_v0 = vld [vmem:[#allocation9] sm:$0xff]   ;;  %v2428_v1 = vmov 0.0   ;;  %v2522_v2 = vld [vmem:[#allocation11 + $0x8] sm:$0xff]   ;;  %v130_v4 = vld [vmem:[#allocation5 + $0x8] sm:$0xff]  ;;  %vm156_vm0 = vcmask 130048   ;;  %vm2429_vm1 = vmmov 0  }
  0x54   :  { %1961 = vmatprep.subr.bf16.mxu1 %v2428_v1  ;;  %1951 = vmatprep.subr.bf16.mxu0 %v2122_v0  ;;  %v129_v3 = vld [vmem:[#allocation5] sm:$0xff]  ;;  %v131_v5 = vld [vmem:[#allocation5 + $0x10] sm:$0xff]  ;;  %v132_v7 = vld [vmem:[#allocation5 + $0x18] sm:$0xff]  ;;  %v2430_v10 = vmov 0   ;;  %s2431_s5 = smov 32   ;;  %vm259_vm2 = vcmask 261120  }
  0x55   :  { %1962 = vmatpush3.bf16.msra.mxu1 %v2522_v2  ;;  %1952 = vmatpush3.bf16.msra.mxu0 %v2122_v0  ;;  %v137_v6 = vpack.c.bf16 %v130_v4, %v129_v3  ;;  %v138_v8 = vpack.c.bf16 %v132_v7, %v131_v5  ;;  %v2526_v9 = vld [vmem:[#allocation11] sm:$0xff]   ;;  %v2547_v12 = vld [vmem:[#allocation12] ss:$0 sm:$0xff]  ;;  %v133_v53 = vld [vmem:[#allocation5 + $0x20] sm:$0xff]  ;;  %s1007_s7 = sld [smem:[#allocation17]]  ;;  %s2432_s28 = smov [#allocation18]  }
  0x56   :  { %1963 = vmatprep.subr.bf16.mxu1 %v2428_v1  ;;  %1965 = vmatprep.mubr.msk.bf16.mxu1 %vm2429_vm1, %v2428_v1  ;;  %v134_v54 = vld [vmem:[#allocation5 + $0x28] sm:$0xff]  ;;  %v135_v55 = vld [vmem:[#allocation5 + $0x30] sm:$0xff]  ;;  %v136_v57 = vld [vmem:[#allocation5 + $0x38] sm:$0xff]  ;;  %s1849_s1 = sld [smem:[#allocation17 + $0x1]]  ;;  %vm1798_vm3 = vcmask 64512  }
  0x57   :  { %1953 = vmatprep.mubr.msk.bf16.mxu0 %vm156_vm0, %v137_v6  ;;  %1977 = vmatprep.subr.bf16.mxu0 %v2428_v1  ;;  %v139_v56 = vpack.c.bf16 %v134_v54, %v133_v53  ;;  %v140_v58 = vpack.c.bf16 %v136_v57, %v135_v55  ;;  %s1852_s11 = sld [smem:[#allocation17 + $0x2]] }
  0x58   :  { %1954 = vmatmul.mubr.msk.bf16.vlgmr.msra.gmra.mxu0 %vm156_vm0, %v138_v8  ;;  %s1855_s14 = sld [smem:[#allocation17 + $0x3]] }
  0x59   :  { %1964 = vmatpush3.bf16.msra.mxu1 %v2526_v9  ;;  %1978 = vmatpush3.bf16.msra.mxu0 %v2522_v2  ;;  %s1858_s18 = sld [smem:[#allocation17 + $0x4]] }
  0x5a   :  { %1969 = vmatprep.subr.bf16.mxu1 %v2428_v1  ;;  %1979 = vmatprep.subr.bf16.mxu0 %v2428_v1  ;;  %s1861_s20 = sld [smem:[#allocation17 + $0x5]] }
  0x5b   :  { %1957 = vmatprep.mubr.msk.bf16.mxu0 %vm156_vm0, %v139_v56  ;;  %s1864_s23 = sld [smem:[#allocation17 + $0x6]] }
  0x5c   :  { %1966 = vmatmul.mubr.bf16.vlgmr.msra.gmra.mxu1 %v2430_v10  ;;  %s1867_s25 = sld [smem:[#allocation17 + $0x7]] }
  0x5d   :  { %1970 = vmatpush3.bf16.msra.mxu1 %v2522_v2  ;;  %1973 = vmatprep.mubr.msk.bf16.mxu1 %vm2429_vm1, %v2428_v1 }
  0x5e   :  { %1971 = vmatprep.subr.bf16.mxu1 %v2428_v1  ;;  %1980 = vmatpush3.bf16.msra.mxu0 %v2526_v9 }
  0x5f   :  { %1993 = vmatprep.subr.bf16.mxu0 %v2428_v1 }
  0x60   :  { %1958 = vmatmul.mubr.msk.bf16.gmra.mxu0 %vm156_vm0, %v140_v58 }
  0x61   :  { %1972 = vmatpush3.bf16.msra.mxu1 %v2526_v9  ;;  %1981 = vmatprep.mubr.msk.bf16.mxu0 %vm2429_vm1, %v2428_v1 }
  0x62   :  { %1985 = vmatprep.subr.bf16.mxu1 %v2428_v1 }
 0x118   :  { %v2545_v11 = vpop.f32.mrf.mxu0 }
 0x119   :  { %v212_v6 = vadd.f32 %v2545_v11, %v2547_v12 }
 0x11a   :  { %v203_v13 = vpop.f32.mrf.mxu0 }
 0x11b   :  { %v204_v14 = vadd.f32 %v2547_v12, %v203_v13 }
 0x11c   :  { %v297_v15 = vpop.f32.mrf.mxu1  ;;  %v2565_v35 = vpop.f32.mrf.mxu0 }
 0x11d   :  { %v303_v16 = vadd.f32 %v297_v15, %v204_v14 }
 0x11e   :  { %v1967_v17 = vpop.f32.mrf.mxu1  ;;  %v206_v36 = vpop.f32.mrf.mxu0 }
 0x11f   :  { %2129 = vtanh.f32 %v303_v16  ;;  %v1827_v21 = vmul.f32 -1.442695, %v303_v16  ;;  %v207_v37 = vadd.f32 %v2547_v12, %v206_v36 }
 0x120   :  { %v300_v18 = vpop.f32.mrf.mxu1  ;;  %v2587_v0 = vpop.f32.mrf.mxu0 }
 0x121   :  { %2131 = vpow2.f32 %v1827_v21 }
 0x122   :  { %v1968_v19 = vpop.f32.mrf.mxu1  ;;  %v2589_v3 = vpop.f32.mrf.mxu0 }
 0x124   :  { %v2591_v4 = vpop.f32.mrf.mxu0 }
 0x126   :  { %v2593_v5 = vpop.f32.mrf.mxu0 }
 0x12c   :  { %v2130_v20 = vpop.eup %2129 }
 0x12d   :  { %313 = vrot.lane.b32.xlu0 %v2130_v20, %s2431_s5 }
 0x12e   :  { %v2132_v22 = vpop.eup %2131 }
 0x12f   :  { %v307_v23 = vadd.f32 1.0, %v2132_v22 }
 0x131   :  { %2133 = vrcp.f32 %v307_v23 }
 0x13e   :  { %v2134_v24 = vpop.eup %2133 }
 0x13f   :  { %v311_v27 = vmul.f32 0.0, %v2134_v24 }
 0x19f   :  { %v314_v25 = vpop.permute.xlu0 %313 }
 0x1a0   :  { %v316_v26 = vmul.f32 %v2134_v24, %v314_v25 }
 0x1a2   :  { %318 = vrot.lane.b32.xlu0 %v316_v26, %s2431_s5 }
 0x214   :  { %v319_v28 = vpop.permute.xlu0 %318 }
 0x215   :  { %v321_v29 = vadd.f32 %v319_v28, %v311_v27 }
 0x217   :  { %2135 = vtanh.f32 %v321_v29 }
 0x224   :  { %v2136_v30 = vpop.eup %2135 }
 0x225   :  { %324 = vrot.lane.b32.xlu1 %v2136_v30, %s2431_s5 }
 0x297   :  { %v325_v31 = vpop.permute.xlu1 %324 }
 0x298   :  { %v2553_v32 = vmul.f32 %v2134_v24, %v325_v31 }
 0x29a   :  { %v335_v33 = vpack.c.bf16 %v2553_v32, %v2553_v32 }
 0x29c   :  { %337 = vrot.lane.b32.xlu1 %v335_v33, %s2418_s16 }
 0x30e   :  { %v338_v34 = vpop.permute.xlu1 %337 }
 0x30f   :  { %1974 = vmatmul.mubr.msk.bf16.vlgmr.msra.gmra.mxu1 %vm259_vm2, %v338_v34 }
 0x310   :  { %1986 = vmatpush3.bf16.msra.mxu1 %v2522_v2  ;;  %1989 = vmatprep.mubr.msk.bf16.mxu1 %vm2429_vm1, %v2428_v1 }
 0x311   :  { %1987 = vmatprep.subr.bf16.mxu1 %v2428_v1 }
 0x314   :  { %1988 = vmatpush3.bf16.msra.mxu1 %v2526_v9 }
 0x315   :  { %2001 = vmatprep.subr.bf16.mxu1 %v2428_v1 }
 0x3cf   :  { %v376_v38 = vpop.f32.mrf.mxu1 }
 0x3d0   :  { %v382_v39 = vadd.f32 %v376_v38, %v207_v37 }
 0x3d1   :  { %v1975_v40 = vpop.f32.mrf.mxu1 }
 0x3d2   :  { %2137 = vtanh.f32 %v382_v39  ;;  %v1829_v44 = vmul.f32 -1.442695, %v382_v39 }
 0x3d3   :  { %v379_v41 = vpop.f32.mrf.mxu1 }
 0x3d4   :  { %2139 = vpow2.f32 %v1829_v44 }
 0x3d5   :  { %v1976_v42 = vpop.f32.mrf.mxu1 }
 0x3df   :  { %v2138_v43 = vpop.eup %2137 }
 0x3e0   :  { %392 = vrot.lane.b32.xlu0 %v2138_v43, %s2431_s5 }
 0x3e1   :  { %v2140_v45 = vpop.eup %2139 }
 0x3e2   :  { %v386_v46 = vadd.f32 1.0, %v2140_v45 }
 0x3e4   :  { %2141 = vrcp.f32 %v386_v46 }
 0x3f1   :  { %v2142_v47 = vpop.eup %2141 }
 0x3f2   :  { %v390_v50 = vmul.f32 %v2142_v47, %v321_v29  ;;  %v215_v29 = vadd.f32 %v2565_v35, %v2547_v12 }
 0x452   :  { %v393_v48 = vpop.permute.xlu0 %392 }
 0x453   :  { %v395_v49 = vmul.f32 %v2142_v47, %v393_v48 }
 0x455   :  { %397 = vrot.lane.b32.xlu1 %v395_v49, %s2431_s5 }
 0x4c7   :  { %v398_v51 = vpop.permute.xlu1 %397 }
 0x4c8   :  { %v400_v52 = vadd.f32 %v398_v51, %v390_v50  ;;  %v220_v51 = vadd.f32 %v2547_v12, %v2589_v3 }
 0x4ca   :  { %2143 = vtanh.f32 %v400_v52 }
 0x4d7   :  { %v2144_v59 = vpop.eup %2143 }
 0x4d8   :  { %403 = vrot.lane.b32.xlu0 %v2144_v59, %s2431_s5 }
 0x54a   :  { %v404_v60 = vpop.permute.xlu0 %403 }
 0x54b   :  { %v2575_v61 = vmul.f32 %v2142_v47, %v404_v60 }
 0x54d   :  { %v415_v62 = vpack.c.bf16 %v2575_v61, %v2575_v61 }
 0x54f   :  { %417 = vrot.lane.b32.xlu1 %v415_v62, %s2418_s16 }
 0x5c1   :  { %v418_v63 = vpop.permute.xlu1 %417 }
 0x5c2   :  { %1982 = vmatmul.mubr.msk.bf16.vlgmr.msra.gmra.mxu0 %vm259_vm2, %v418_v63 }
 0x5c3   :  { %1994 = vmatpush3.bf16.msra.mxu0 %v2522_v2  ;;  %1997 = vmatprep.mubr.msk.bf16.mxu0 %vm2429_vm1, %v2428_v1 }
 0x5c4   :  { %1995 = vmatprep.subr.bf16.mxu0 %v2428_v1 }
 0x5c7   :  { %1996 = vmatpush3.bf16.msra.mxu0 %v2526_v9 }
 0x5c8   :  { %2009 = vmatprep.subr.bf16.mxu0 %v2428_v1 }
 0x682   :  { %v456_v7 = vpop.f32.mrf.mxu0 }
 0x683   :  { %v462_v8 = vadd.f32 %v456_v7, %v212_v6 }
 0x684   :  { %v1983_v10 = vpop.f32.mrf.mxu0 }
 0x685   :  { %2145 = vtanh.f32 %v462_v8  ;;  %v1831_v16 = vmul.f32 -1.442695, %v462_v8 }
 0x686   :  { %v459_v13 = vpop.f32.mrf.mxu0 }
 0x687   :  { %2147 = vpow2.f32 %v1831_v16 }
 0x688   :  { %v1984_v14 = vpop.f32.mrf.mxu0 }
 0x692   :  { %v2146_v15 = vpop.eup %2145 }
 0x693   :  { %472 = vrot.lane.b32.xlu0 %v2146_v15, %s2431_s5 }
 0x694   :  { %v2148_v17 = vpop.eup %2147 }
 0x695   :  { %v466_v18 = vadd.f32 1.0, %v2148_v17  ;;  %v223_v17 = vadd.f32 %v2547_v12, %v2593_v5 }
 0x697   :  { %2149 = vrcp.f32 %v466_v18 }
 0x6a4   :  { %v2150_v19 = vpop.eup %2149 }
 0x6a5   :  { %v470_v11 = vmul.f32 %v2150_v19, %v400_v52 }
 0x705   :  { %v473_v20 = vpop.permute.xlu0 %472 }
 0x706   :  { %v475_v21 = vmul.f32 %v2150_v19, %v473_v20 }
 0x708   :  { %477 = vrot.lane.b32.xlu1 %v475_v21, %s2431_s5 }
 0x77a   :  { %v478_v22 = vpop.permute.xlu1 %477 }
 0x77b   :  { %v480_v23 = vadd.f32 %v478_v22, %v470_v11 }
 0x77d   :  { %2151 = vtanh.f32 %v480_v23 }
 0x78a   :  { %v2152_v24 = vpop.eup %2151 }
 0x78b   :  { %483 = vrot.lane.b32.xlu0 %v2152_v24, %s2431_s5 }
 0x7fd   :  { %v484_v25 = vpop.permute.xlu0 %483 }
 0x7fe   :  { %v2600_v26 = vmul.f32 %v2150_v19, %v484_v25 }
 0x800   :  { %v495_v27 = vpack.c.bf16 %v2600_v26, %v2600_v26 }
 0x802   :  { %497 = vrot.lane.b32.xlu1 %v495_v27, %s2418_s16 }
 0x874   :  { %v498_v28 = vpop.permute.xlu1 %497 }
 0x875   :  { %1990 = vmatmul.mubr.msk.bf16.vlgmr.msra.gmra.mxu1 %vm259_vm2, %v498_v28 }
 0x876   :  { %2002 = vmatpush3.bf16.msra.mxu1 %v2522_v2  ;;  %2005 = vmatprep.mubr.msk.bf16.mxu1 %vm2429_vm1, %v2428_v1 }
 0x877   :  { %2003 = vmatprep.subr.bf16.mxu1 %v2428_v1 }
 0x87a   :  { %2004 = vmatpush3.bf16.msra.mxu1 %v2526_v9 }
 0x87b   :  { %2017 = vmatprep.subr.bf16.mxu1 %v2428_v1 }
 0x935   :  { %v536_v30 = vpop.f32.mrf.mxu1 }
 0x936   :  { %v542_v31 = vadd.f32 %v536_v30, %v215_v29 }
 0x937   :  { %v1991_v33 = vpop.f32.mrf.mxu1 }
 0x938   :  { %2153 = vtanh.f32 %v542_v31  ;;  %v1833_v38 = vmul.f32 -1.442695, %v542_v31 }
 0x939   :  { %v539_v34 = vpop.f32.mrf.mxu1 }
 0x93a   :  { %2155 = vpow2.f32 %v1833_v38 }
 0x93b   :  { %v1992_v36 = vpop.f32.mrf.mxu1 }
 0x945   :  { %v2154_v37 = vpop.eup %2153 }
 0x946   :  { %552 = vrot.lane.b32.xlu0 %v2154_v37, %s2431_s5  ;;  %v228_v37 = vadd.f32 %v2587_v0, %v2547_v12 }
 0x947   :  { %v2156_v39 = vpop.eup %2155 }
 0x948   :  { %v546_v40 = vadd.f32 1.0, %v2156_v39 }
 0x94a   :  { %2157 = vrcp.f32 %v546_v40 }
 0x957   :  { %v2158_v41 = vpop.eup %2157 }
 0x958   :  { %v550_v35 = vmul.f32 %v2158_v41, %v480_v23 }
 0x9b8   :  { %v553_v42 = vpop.permute.xlu0 %552 }
 0x9b9   :  { %v555_v43 = vmul.f32 %v2158_v41, %v553_v42 }
 0x9bb   :  { %557 = vrot.lane.b32.xlu1 %v555_v43, %s2431_s5 }
 0xa2d   :  { %v558_v44 = vpop.permute.xlu1 %557 }
 0xa2e   :  { %v560_v45 = vadd.f32 %v558_v44, %v550_v35 }
 0xa30   :  { %2159 = vtanh.f32 %v560_v45 }
 0xa3d   :  { %v2160_v46 = vpop.eup %2159 }
 0xa3e   :  { %563 = vrot.lane.b32.xlu0 %v2160_v46, %s2431_s5 }
 0xab0   :  { %v564_v47 = vpop.permute.xlu0 %563 }
 0xab1   :  { %v2617_v48 = vmul.f32 %v2158_v41, %v564_v47 }
 0xab3   :  { %v575_v49 = vpack.c.bf16 %v2617_v48, %v2617_v48 }
 0xab5   :  { %577 = vrot.lane.b32.xlu1 %v575_v49, %s2418_s16 }
 0xb27   :  { %v578_v50 = vpop.permute.xlu1 %577 }
 0xb28   :  { %1998 = vmatmul.mubr.msk.bf16.vlgmr.msra.gmra.mxu0 %vm259_vm2, %v578_v50 }
 0xb29   :  { %2010 = vmatpush3.bf16.msra.mxu0 %v2522_v2  ;;  %2013 = vmatprep.mubr.msk.bf16.mxu0 %vm2429_vm1, %v2428_v1 }
 0xb2a   :  { %2011 = vmatprep.subr.bf16.mxu0 %v2428_v1 }
 0xb2d   :  { %2012 = vmatpush3.bf16.msra.mxu0 %v2526_v9 }
 0xbe8   :  { %v616_v52 = vpop.f32.mrf.mxu0 }
 0xbe9   :  { %v622_v53 = vadd.f32 %v616_v52, %v220_v51 }
 0xbea   :  { %v1999_v54 = vpop.f32.mrf.mxu0 }
 0xbeb   :  { %2161 = vtanh.f32 %v622_v53  ;;  %v1835_v58 = vmul.f32 -1.442695, %v622_v53 }
 0xbec   :  { %v619_v55 = vpop.f32.mrf.mxu0 }
 0xbed   :  { %2163 = vpow2.f32 %v1835_v58 }
 0xbee   :  { %v2000_v56 = vpop.f32.mrf.mxu0 }
 0xbf8   :  { %v2162_v57 = vpop.eup %2161 }
 0xbf9   :  { %632 = vrot.lane.b32.xlu0 %v2162_v57, %s2431_s5  ;;  %v231_v57 = vadd.f32 %v2591_v4, %v2547_v12 }
 0xbfa   :  { %v2164_v59 = vpop.eup %2163 }
 0xbfb   :  { %v626_v60 = vadd.f32 1.0, %v2164_v59 }
 0xbfd   :  { %2165 = vrcp.f32 %v626_v60 }
 0xc0a   :  { %v2166_v62 = vpop.eup %2165 }
 0xc0b   :  { %v630_v3 = vmul.f32 %v2166_v62, %v560_v45 }
 0xc6b   :  { %v633_v63 = vpop.permute.xlu0 %632 }
 0xc6c   :  { %v635_v6 = vmul.f32 %v2166_v62, %v633_v63 }
 0xc6e   :  { %637 = vrot.lane.b32.xlu1 %v635_v6, %s2431_s5 }
 0xce0   :  { %v638_v7 = vpop.permute.xlu1 %637 }
 0xce1   :  { %v640_v8 = vadd.f32 %v638_v7, %v630_v3 }
 0xce3   :  { %2167 = vtanh.f32 %v640_v8 }
 0xcf0   :  { %v2168_v10 = vpop.eup %2167 }
 0xcf1   :  { %643 = vrot.lane.b32.xlu0 %v2168_v10, %s2431_s5 }
 0xd63   :  { %v644_v13 = vpop.permute.xlu0 %643 }
 0xd64   :  { %v2633_v14 = vmul.f32 %v2166_v62, %v644_v13 }
 0xd66   :  { %v655_v15 = vpack.c.bf16 %v2633_v14, %v2633_v14 }
 0xd68   :  { %657 = vrot.lane.b32.xlu1 %v655_v15, %s2418_s16 }
 0xdda   :  { %v658_v16 = vpop.permute.xlu1 %657 }
 0xddb   :  { %2006 = vmatmul.mubr.msk.bf16.vlgmr.msra.gmra.mxu1 %vm259_vm2, %v658_v16 }
 0xddc   :  { %2018 = vmatpush3.bf16.msra.mxu1 %v2522_v2  ;;  %2021 = vmatprep.mubr.msk.bf16.mxu1 %vm2429_vm1, %v2428_v1 }
 0xddd   :  { %2019 = vmatprep.subr.bf16.mxu1 %v2428_v1 }
 0xde0   :  { %2020 = vmatpush3.bf16.msra.mxu1 %v2526_v9 }
 0xde1   :  { %2037 = vmatprep.subr.bf16.mxu1 %v2428_v1 }
 0xe9b   :  { %v696_v18 = vpop.f32.mrf.mxu1 }
 0xe9c   :  { %v702_v19 = vadd.f32 %v696_v18, %v223_v17 }
 0xe9d   :  { %v2007_v20 = vpop.f32.mrf.mxu1 }
 0xe9e   :  { %2169 = vtanh.f32 %v702_v19  ;;  %v1837_v2 = vmul.f32 -1.442695, %v702_v19  ;;  %v2125_v19 = vld [vmem:[#allocation14 + $0x8] sm:$0xff]   ;;  %v2126_v20 = vld [vmem:[#allocation14] sm:$0xff]  }
 0xe9f   :  { %v699_v21 = vpop.f32.mrf.mxu1  ;;  %2025 = vmatprep.subr.bf16.mxu0 %v2125_v19 }
 0xea0   :  { %2171 = vpow2.f32 %v1837_v2  ;;  %v2689_v21 = vld [vmem:[#allocation15] sm:$0xff]  }
 0xea1   :  { %v2008_v11 = vpop.f32.mrf.mxu1 }
 0xeab   :  { %v2170_v22 = vpop.eup %2169 }
 0xeac   :  { %712 = vrot.lane.b32.xlu0 %v2170_v22, %s2431_s5 }
 0xead   :  { %v2172_v23 = vpop.eup %2171 }
 0xeae   :  { %v706_v24 = vadd.f32 1.0, %v2172_v23 }
 0xeb0   :  { %2173 = vrcp.f32 %v706_v24 }
 0xebd   :  { %v2174_v9 = vpop.eup %2173 }
 0xebe   :  { %v710_v5 = vmul.f32 %v2174_v9, %v640_v8 }
 0xf1e   :  { %v713_v25 = vpop.permute.xlu0 %712 }
 0xf1f   :  { %v715_v27 = vmul.f32 %v2174_v9, %v713_v25 }
 0xf21   :  { %717 = vrot.lane.b32.xlu1 %v715_v27, %s2431_s5 }
 0xf93   :  { %v718_v28 = vpop.permute.xlu1 %717 }
 0xf94   :  { %v720_v29 = vadd.f32 %v718_v28, %v710_v5 }
 0xf96   :  { %2175 = vtanh.f32 %v720_v29 }
 0xfa3   :  { %v2176_v30 = vpop.eup %2175 }
 0xfa4   :  { %723 = vrot.lane.b32.xlu0 %v2176_v30, %s2431_s5 }
0x1016   :  { %v724_v31 = vpop.permute.xlu0 %723 }
0x1017   :  { %v2650_v33 = vmul.f32 %v2174_v9, %v724_v31  ;;  %v1008_v31 = vstv %s1007_s7 }
0x1019   :  { %v735_v34 = vpack.c.bf16 %v2650_v33, %v2650_v33 }
0x101b   :  { %737 = vrot.lane.b32.xlu1 %v735_v34, %s2418_s16 }
0x108d   :  { %v738_v36 = vpop.permute.xlu1 %737 }
0x108e   :  { %2014 = vmatmul.mubr.msk.bf16.vlgmr.msra.gmra.mxu0 %vm259_vm2, %v738_v36  ;;  %v1848_v36 = vld [vmem:[%s2862_s6] ss:$0 sm:$0xff] }
0x108f   :  { %2026 = vmatpush3.bf16.msra.mxu0 %v2125_v19 }
0x1090   :  { %2027 = vmatprep.subr.bf16.mxu0 %v2126_v20 }
0x1093   :  { %2028 = vmatpush3.bf16.msra.mxu0 %v2126_v20 }
0x1094   :  { %2053 = vmatprep.subr.bf16.mxu0 %v2428_v1 }
0x114e   :  { %v776_v38 = vpop.f32.mrf.mxu0 }
0x114f   :  { %v782_v39 = vadd.f32 %v776_v38, %v228_v37 }
0x1150   :  { %v2015_v40 = vpop.f32.mrf.mxu0 }
0x1151   :  { %2177 = vtanh.f32 %v782_v39  ;;  %v1839_v35 = vmul.f32 -1.442695, %v782_v39 }
0x1152   :  { %v779_v41 = vpop.f32.mrf.mxu0 }
0x1153   :  { %2179 = vpow2.f32 %v1839_v35 }
0x1154   :  { %v2016_v42 = vpop.f32.mrf.mxu0 }
0x115e   :  { %v2178_v43 = vpop.eup %2177 }
0x115f   :  { %792 = vrot.lane.b32.xlu0 %v2178_v43, %s2431_s5 }
0x1160   :  { %v2180_v44 = vpop.eup %2179 }
0x1161   :  { %v786_v45 = vadd.f32 1.0, %v2180_v44 }
0x1163   :  { %2181 = vrcp.f32 %v786_v45 }
0x1170   :  { %v2182_v46 = vpop.eup %2181 }
0x1171   :  { %v790_v0 = vmul.f32 %v2182_v46, %v720_v29 }
0x11d1   :  { %v793_v47 = vpop.permute.xlu0 %792 }
0x11d2   :  { %v795_v49 = vmul.f32 %v2182_v46, %v793_v47 }
0x11d4   :  { %797 = vrot.lane.b32.xlu1 %v795_v49, %s2431_s5 }
0x1246   :  { %v798_v50 = vpop.permute.xlu1 %797 }
0x1247   :  { %v800_v51 = vadd.f32 %v798_v50, %v790_v0 }
0x1249   :  { %2183 = vtanh.f32 %v800_v51 }
0x1256   :  { %v2184_v52 = vpop.eup %2183 }
0x1257   :  { %803 = vrot.lane.b32.xlu0 %v2184_v52, %s2431_s5 }
0x12c9   :  { %v804_v53 = vpop.permute.xlu0 %803 }
0x12ca   :  { %v2661_v54 = vmul.f32 %v2182_v46, %v804_v53 }
0x12cc   :  { %v815_v55 = vpack.c.bf16 %v2661_v54, %v2661_v54 }
0x12ce   :  { %817 = vrot.lane.b32.xlu1 %v815_v55, %s2418_s16 }
0x1340   :  { %v818_v56 = vpop.permute.xlu1 %817 }
0x1341   :  { %2022 = vmatmul.mubr.msk.bf16.vlgmr.msra.gmra.mxu1 %vm259_vm2, %v818_v56 }
0x1342   :  { %2041 = vmatprep.mubr.msk.bf16.mxu1 %vm2429_vm1, %v2428_v1 }
0x1401   :  { %v856_v58 = vpop.f32.mrf.mxu1 }
0x1402   :  { %v862_v59 = vadd.f32 %v856_v58, %v231_v57 }
0x1403   :  { %v2023_v60 = vpop.f32.mrf.mxu1 }
0x1404   :  { %2185 = vtanh.f32 %v862_v59  ;;  %v1841_v3 = vmul.f32 -1.442695, %v862_v59  ;;  %v1021_v60 = vstv %s1849_s1  ;;  %s1806_s1 = sshll.u32 %s2432_s28, 4  ;;  %s1807_s1 = int_to_ptr.vmem [resolvable:$true] %s1806_s1 }
0x1405   :  { %v859_v62 = vpop.f32.mrf.mxu1  ;;  %p2390_p3 = scmp.lt.s32.totalorder %s1807_s1, %s1807_s1 }
0x1406   :  { %2187 = vpow2.f32 %v1841_v3 }
0x1407   :  { %v2024_v63 = vpop.f32.mrf.mxu1 }
0x1408   :  { %v1851_v63 = vld [vmem:[%s2862_s6 + $0x1] ss:$0 sm:$0xff] }
0x1411   :  { %v2186_v6 = vpop.eup %2185 }
0x1412   :  { %872 = vrot.lane.b32.xlu0 %v2186_v6, %s2431_s5 }
0x1413   :  { %v2188_v7 = vpop.eup %2187 }
0x1414   :  { %v866_v8 = vadd.f32 1.0, %v2188_v7 }
0x1416   :  { %2189 = vrcp.f32 %v866_v8 }
0x1423   :  { %v2190_v10 = vpop.eup %2189 }
0x1424   :  { %v870_v12 = vmul.f32 %v2190_v10, %v800_v51 }
0x1484   :  { %v873_v13 = vpop.permute.xlu0 %872 }
0x1485   :  { %v875_v15 = vmul.f32 %v2190_v10, %v873_v13 }
0x1487   :  { %877 = vrot.lane.b32.xlu1 %v875_v15, %s2431_s5 }
0x148b   :  { %329 = vrot.lane.b32.xlu1 %v2553_v32, %s2418_s16 }
0x148f   :  { %488 = vrot.lane.b32.xlu1 %v2600_v26, %s2418_s16  ;;  %v2686_v26 = vld [vmem:[#allocation15 + $0x8] sm:$0xff]  }
0x1490   :  { %2038 = vmatpush3.bf16.msra.mxu1 %v2686_v26 }
0x1491   :  { %2039 = vmatprep.subr.bf16.mxu1 %v2428_v1 }
0x1494   :  { %2040 = vmatpush3.bf16.msra.mxu1 %v2689_v21 }
0x1495   :  { %2045 = vmatprep.subr.bf16.mxu1 %v2428_v1 }
0x14f9   :  { %v878_v4 = vpop.permute.xlu1 %877 }
0x14fa   :  { %v2677_v16 = vadd.f32 %v878_v4, %v870_v12 }
0x14fc   :  { %2191 = vtanh.f32 %v2677_v16 }
0x14fd   :  { %v330_v17 = vpop.permute.xlu1 %329 }
0x14fe   :  { %332 = vst.msk [vmem:[#allocation2] sm:$0xff] %vm259_vm2, %v330_v17 }
0x1501   :  { %v489_v18 = vpop.permute.xlu1 %488 }
0x1502   :  { %492 = vst.msk [vmem:[#allocation2 + $0x10] sm:$0xff] %vm259_vm2, %v489_v18 }
0x1509   :  { %v2192_v32 = vpop.eup %2191  ;;  %v895_v25 = vld [vmem:[#allocation2 + $0x10] sm:$0xff] }
0x150a   :  { %883 = vrot.lane.b32.xlu0 %v2192_v32, %s2431_s5 }
0x150e   :  { %408 = vrot.lane.b32.xlu0 %v2575_v61, %s2418_s16 }
0x1512   :  { %568 = vrot.lane.b32.xlu0 %v2617_v48, %s2418_s16  ;;  %v893_v48 = vld [vmem:[#allocation2] sm:$0xff] }
0x157c   :  { %v884_v11 = vpop.permute.xlu0 %883 }
0x157d   :  { %v2696_v22 = vmul.f32 %v2190_v10, %v884_v11 }
0x157f   :  { %v1122_v61 = vpack.c.bf16 %v2696_v22, %v2696_v22 }
0x1580   :  { %v409_v2 = vpop.permute.xlu0 %408 }
0x1581   :  { %412 = vst.msk [vmem:[#allocation2 + $0x8] sm:$0xff] %vm259_vm2, %v409_v2  ;;  %1124 = vrot.lane.b32.xlu1 %v1122_v61, %s2418_s16 }
0x1584   :  { %v569_v23 = vpop.permute.xlu0 %568 }
0x1585   :  { %572 = vst.msk [vmem:[#allocation2 + $0x18] sm:$0xff] %vm259_vm2, %v569_v23 }
0x1588   :  { %v894_v24 = vld [vmem:[#allocation2 + $0x8] sm:$0xff] }
0x1589   :  { %v901_v9 = vpack.c.bf16 %v894_v24, %v893_v48 }
0x158b   :  { %2029 = vmatprep.mubr.msk.bf16.mxu0 %vm259_vm2, %v901_v9 }
0x158c   :  { %v896_v27 = vld [vmem:[#allocation2 + $0x18] sm:$0xff] }
0x158d   :  { %v902_v5 = vpack.c.bf16 %v896_v27, %v895_v25 }
0x158f   :  { %2030 = vmatmul.mubr.msk.bf16.vlgmr.msra.gmra.mxu0 %vm259_vm2, %v902_v5 }
0x1590   :  { %2054 = vmatpush3.bf16.msra.mxu0 %v2686_v26 }
0x1591   :  { %2055 = vmatprep.subr.bf16.mxu0 %v2428_v1 }
0x1594   :  { %2056 = vmatpush3.bf16.msra.mxu0 %v2689_v21 }
0x1595   :  { %2069 = vmatprep.subr.bf16.mxu0 %v2428_v1 }
0x15f3   :  { %v1125_v28 = vpop.permute.xlu1 %1124 }
0x15f4   :  { %2042 = vmatmul.mubr.msk.bf16.vlgmr.msra.gmra.mxu1 %vm259_vm2, %v1125_v28 }
0x15f5   :  { %2046 = vmatpush3.bf16.msra.mxu1 %v2686_v26  ;;  %2049 = vmatprep.mubr.msk.bf16.mxu1 %vm2429_vm1, %v2428_v1 }
0x15f6   :  { %2047 = vmatprep.subr.bf16.mxu1 %v2428_v1 }
0x15f9   :  { %2048 = vmatpush3.bf16.msra.mxu1 %v2689_v21 }
0x15fa   :  { %2061 = vmatprep.subr.bf16.mxu1 %v2428_v1 }
0x164f   :  { %v2716_v29 = vpop.f32.mrf.mxu0 }
0x1651   :  { %v967_v30 = vpop.f32.mrf.mxu0 }
0x1652   :  { %v1009_v34 = vmul.f32 %v1008_v31, %v967_v30 }
0x1653   :  { %v2733_v58 = vpop.f32.mrf.mxu0 }
0x1654   :  { %v1017_v37 = vadd.f32 %v1848_v36, %v1009_v34  ;;  %v1035_v36 = vstv %s1852_s11 }
0x1655   :  { %v970_v59 = vpop.f32.mrf.mxu0 }
0x1656   :  { %v1022_v62 = vmul.f32 %v1021_v60, %v970_v59 }
0x1658   :  { %v1031_v6 = vadd.f32 %v1851_v63, %v1022_v62  ;;  %v1049_v63 = vstv %s1855_s14 }
0x16b4   :  { %v1175_v38 = vpop.f32.mrf.mxu1 }
0x16b5   :  { %v1181_v39 = vadd.f32 %v1175_v38, %v1017_v37  ;;  %v1036_v38 = vmul.f32 %v2716_v29, %v1035_v36 }
0x16b6   :  { %v2043_v40 = vpop.f32.mrf.mxu1 }
0x16b7   :  { %2193 = vtanh.f32 %v1181_v39  ;;  %v1873_v35 = vmul.f32 -1.442695, %v1181_v39  ;;  %v1854_v39 = vld [vmem:[%s2862_s6 + $0x2] ss:$0 sm:$0xff] }
0x16b8   :  { %v1178_v41 = vpop.f32.mrf.mxu1 }
0x16b9   :  { %2195 = vpow2.f32 %v1873_v35  ;;  %v1045_v41 = vadd.f32 %v1854_v39, %v1036_v38 }
0x16ba   :  { %v2044_v42 = vpop.f32.mrf.mxu1 }
0x16c4   :  { %v2194_v43 = vpop.eup %2193 }
0x16c5   :  { %1191 = vrot.lane.b32.xlu0 %v2194_v43, %s2431_s5 }
0x16c6   :  { %v2196_v44 = vpop.eup %2195 }
0x16c7   :  { %v1185_v45 = vadd.f32 1.0, %v2196_v44 }
0x16c9   :  { %2197 = vrcp.f32 %v1185_v45 }
0x16d6   :  { %v2198_v46 = vpop.eup %2197 }
0x16d7   :  { %v1189_v0 = vmul.f32 %v2198_v46, %v2677_v16 }
0x1737   :  { %v1192_v47 = vpop.permute.xlu0 %1191 }
0x1738   :  { %v1194_v49 = vmul.f32 %v2198_v46, %v1192_v47 }
0x173a   :  { %1196 = vrot.lane.b32.xlu1 %v1194_v49, %s2431_s5 }
0x17ac   :  { %v1197_v50 = vpop.permute.xlu1 %1196 }
0x17ad   :  { %v1199_v51 = vadd.f32 %v1197_v50, %v1189_v0 }
0x17af   :  { %2199 = vtanh.f32 %v1199_v51 }
0x17bc   :  { %v2200_v52 = vpop.eup %2199 }
0x17bd   :  { %1202 = vrot.lane.b32.xlu0 %v2200_v52, %s2431_s5 }
0x182f   :  { %v1203_v53 = vpop.permute.xlu0 %1202 }
0x1830   :  { %v1205_v55 = vmul.f32 %v2198_v46, %v1203_v53 }
0x1832   :  { %v1207_v56 = vpack.c.bf16 %v1205_v55, %v1205_v55 }
0x1834   :  { %1209 = vrot.lane.b32.xlu1 %v1207_v56, %s2418_s16 }
0x18a6   :  { %v1210_v57 = vpop.permute.xlu1 %1209 }
0x18a7   :  { %2050 = vmatmul.mubr.msk.bf16.vlgmr.msra.gmra.mxu1 %vm259_vm2, %v1210_v57 }
0x18a8   :  { %2062 = vmatpush3.bf16.msra.mxu1 %v2686_v26  ;;  %2065 = vmatprep.mubr.msk.bf16.mxu1 %vm2429_vm1, %v2428_v1 }
0x18a9   :  { %2063 = vmatprep.subr.bf16.mxu1 %v2428_v1 }
0x18ac   :  { %2064 = vmatpush3.bf16.msra.mxu1 %v2689_v21 }
0x18ad   :  { %2077 = vmatprep.subr.bf16.mxu1 %v2428_v1 }
0x1967   :  { %v1248_v3 = vpop.f32.mrf.mxu1 }
0x1968   :  { %v1254_v7 = vadd.f32 %v1248_v3, %v1031_v6  ;;  %v1050_v6 = vmul.f32 %v2733_v58, %v1049_v63  ;;  %v1857_v3 = vld [vmem:[%s2862_s6 + $0x3] ss:$0 sm:$0xff] }
0x1969   :  { %v2051_v8 = vpop.f32.mrf.mxu1 }
0x196a   :  { %2201 = vtanh.f32 %v1254_v7  ;;  %v1875_v12 = vmul.f32 -1.442695, %v1254_v7  ;;  %v1059_v7 = vadd.f32 %v1857_v3, %v1050_v6 }
0x196b   :  { %v1251_v10 = vpop.f32.mrf.mxu1 }
0x196c   :  { %2203 = vpow2.f32 %v1875_v12 }
0x196d   :  { %v2052_v13 = vpop.f32.mrf.mxu1 }
0x1977   :  { %v2202_v15 = vpop.eup %2201 }
0x1978   :  { %1264 = vrot.lane.b32.xlu0 %v2202_v15, %s2431_s5 }
0x1979   :  { %v2204_v4 = vpop.eup %2203 }
0x197a   :  { %v1258_v16 = vadd.f32 1.0, %v2204_v4 }
0x197c   :  { %2205 = vrcp.f32 %v1258_v16 }
0x1989   :  { %v2206_v17 = vpop.eup %2205 }
0x198a   :  { %v1262_v20 = vmul.f32 %v2206_v17, %v1199_v51 }
0x19ea   :  { %v1265_v18 = vpop.permute.xlu0 %1264 }
0x19eb   :  { %v1267_v19 = vmul.f32 %v2206_v17, %v1265_v18 }
0x19ed   :  { %1269 = vrot.lane.b32.xlu1 %v1267_v19, %s2431_s5 }
0x19f1   :  { %648 = vrot.lane.b32.xlu1 %v2633_v14, %s2418_s16 }
0x19f5   :  { %808 = vrot.lane.b32.xlu1 %v2661_v54, %s2418_s16 }
0x1a5f   :  { %v1270_v32 = vpop.permute.xlu1 %1269 }
0x1a60   :  { %v1272_v11 = vadd.f32 %v1270_v32, %v1262_v20 }
0x1a62   :  { %2207 = vtanh.f32 %v1272_v11 }
0x1a63   :  { %v649_v61 = vpop.permute.xlu1 %648 }
0x1a64   :  { %652 = vst.msk [vmem:[#allocation2 + $0x20] sm:$0xff] %vm259_vm2, %v649_v61 }
0x1a67   :  { %v809_v2 = vpop.permute.xlu1 %808 }
0x1a68   :  { %812 = vst.msk [vmem:[#allocation2 + $0x30] sm:$0xff] %vm259_vm2, %v809_v2 }
0x1a6b   :  { %v897_v25 = vld [vmem:[#allocation2 + $0x20] sm:$0xff] }
0x1a6f   :  { %v2208_v23 = vpop.eup %2207 }
0x1a70   :  { %1275 = vrot.lane.b32.xlu0 %v2208_v23, %s2431_s5 }
0x1a74   :  { %728 = vrot.lane.b32.xlu0 %v2650_v33, %s2418_s16  ;;  %v899_v33 = vld [vmem:[#allocation2 + $0x30] sm:$0xff] }
0x1a78   :  { %888 = vrot.lane.b32.xlu0 %v2696_v22, %s2418_s16 }
0x1ae2   :  { %v1276_v14 = vpop.permute.xlu0 %1275 }
0x1ae3   :  { %v1278_v54 = vmul.f32 %v2206_v17, %v1276_v14 }
0x1ae5   :  { %v1280_v48 = vpack.c.bf16 %v1278_v54, %v1278_v54 }
0x1ae6   :  { %v729_v24 = vpop.permute.xlu0 %728 }
0x1ae7   :  { %732 = vst.msk [vmem:[#allocation2 + $0x28] sm:$0xff] %vm259_vm2, %v729_v24  ;;  %1282 = vrot.lane.b32.xlu1 %v1280_v48, %s2418_s16  ;;  %v1063_v24 = vstv %s1858_s18 }
0x1aea   :  { %v889_v9 = vpop.permute.xlu0 %888 }
0x1aeb   :  { %892 = vst.msk [vmem:[#allocation2 + $0x38] sm:$0xff] %vm259_vm2, %v889_v9 }
0x1aee   :  { %v898_v27 = vld [vmem:[#allocation2 + $0x28] sm:$0xff] }
0x1aef   :  { %v903_v5 = vpack.c.bf16 %v898_v27, %v897_v25  ;;  %v1860_v25 = vld [vmem:[%s2862_s6 + $0x4] ss:$0 sm:$0xff] }
0x1af1   :  { %2033 = vmatprep.mubr.msk.bf16.mxu0 %vm259_vm2, %v903_v5 }
0x1af2   :  { %v900_v28 = vld [vmem:[#allocation2 + $0x38] sm:$0xff] }
0x1af3   :  { %v904_v30 = vpack.c.bf16 %v900_v28, %v899_v33 }
0x1af5   :  { %2034 = vmatmul.mubr.msk.bf16.gmra.mxu0 %vm259_vm2, %v904_v30 }
0x1af6   :  { %2057 = vmatprep.mubr.msk.bf16.mxu0 %vm2429_vm1, %v2428_v1 }
0x1b59   :  { %v1283_v22 = vpop.permute.xlu1 %1282 }
0x1b5a   :  { %2058 = vmatmul.mubr.msk.bf16.vlgmr.msra.gmra.mxu0 %vm259_vm2, %v1283_v22 }
0x1b5b   :  { %2070 = vmatpush3.bf16.msra.mxu0 %v2686_v26  ;;  %2073 = vmatprep.mubr.msk.bf16.mxu0 %vm2429_vm1, %v2428_v1 }
0x1b5c   :  { %2071 = vmatprep.subr.bf16.mxu0 %v2428_v1 }
0x1b5f   :  { %2072 = vmatpush3.bf16.msra.mxu0 %v2689_v21 }
0x1b60   :  { %2085 = vmatprep.subr.bf16.mxu0 %v2428_v1 }
0x1bb5   :  { %v2765_v31 = vpop.f32.mrf.mxu0 }
0x1bb7   :  { %v2767_v34 = vpop.f32.mrf.mxu0 }
0x1bb8   :  { %v1064_v9 = vmul.f32 %v1063_v24, %v2767_v34 }
0x1bb9   :  { %v2769_v37 = vpop.f32.mrf.mxu0 }
0x1bba   :  { %v1073_v27 = vadd.f32 %v1860_v25, %v1064_v9 }
0x1bbb   :  { %v2775_v40 = vpop.f32.mrf.mxu0 }
0x1c1a   :  { %v1321_v42 = vpop.f32.mrf.mxu0 }
0x1c1b   :  { %v1327_v43 = vadd.f32 %v1321_v42, %v1045_v41 }
0x1c1c   :  { %v2059_v35 = vpop.f32.mrf.mxu0 }
0x1c1d   :  { %2209 = vtanh.f32 %v1327_v43  ;;  %v1877_v47 = vmul.f32 -1.442695, %v1327_v43 }
0x1c1e   :  { %v1324_v44 = vpop.f32.mrf.mxu0 }
0x1c1f   :  { %2211 = vpow2.f32 %v1877_v47 }
0x1c20   :  { %v2060_v45 = vpop.f32.mrf.mxu0 }
0x1c2a   :  { %v2210_v46 = vpop.eup %2209 }
0x1c2b   :  { %1337 = vrot.lane.b32.xlu0 %v2210_v46, %s2431_s5 }
0x1c2c   :  { %v2212_v49 = vpop.eup %2211 }
0x1c2d   :  { %v1331_v29 = vadd.f32 1.0, %v2212_v49 }
0x1c2f   :  { %2213 = vrcp.f32 %v1331_v29 }
0x1c3c   :  { %v2214_v0 = vpop.eup %2213 }
0x1c3d   :  { %v1335_v52 = vmul.f32 %v2214_v0, %v1272_v11 }
0x1c9d   :  { %v1338_v50 = vpop.permute.xlu0 %1337 }
0x1c9e   :  { %v1340_v51 = vmul.f32 %v2214_v0, %v1338_v50  ;;  %v1077_v50 = vstv %s1861_s20 }
0x1ca0   :  { %1342 = vrot.lane.b32.xlu1 %v1340_v51, %s2431_s5  ;;  %v1078_v51 = vmul.f32 %v1077_v50, %v2775_v40 }
0x1d12   :  { %v1343_v53 = vpop.permute.xlu1 %1342 }
0x1d13   :  { %v1345_v55 = vadd.f32 %v1343_v53, %v1335_v52  ;;  %v1863_v52 = vld [vmem:[%s2862_s6 + $0x5] ss:$0 sm:$0xff] }
0x1d14   :  { %v1087_v53 = vadd.f32 %v1863_v52, %v1078_v51 }
0x1d15   :  { %2215 = vtanh.f32 %v1345_v55 }
0x1d22   :  { %v2216_v56 = vpop.eup %2215 }
0x1d23   :  { %1348 = vrot.lane.b32.xlu0 %v2216_v56, %s2431_s5 }
0x1d95   :  { %v1349_v57 = vpop.permute.xlu0 %1348 }
0x1d96   :  { %v1351_v59 = vmul.f32 %v2214_v0, %v1349_v57 }
0x1d98   :  { %v1353_v60 = vpack.c.bf16 %v1351_v59, %v1351_v59 }
0x1d9a   :  { %1355 = vrot.lane.b32.xlu1 %v1353_v60, %s2418_s16 }
0x1e0c   :  { %v1356_v62 = vpop.permute.xlu1 %1355 }
0x1e0d   :  { %2066 = vmatmul.mubr.msk.bf16.vlgmr.msra.gmra.mxu1 %vm259_vm2, %v1356_v62 }
0x1e0e   :  { %2078 = vmatpush3.bf16.msra.mxu1 %v2686_v26  ;;  %2081 = vmatprep.mubr.msk.bf16.mxu1 %vm2429_vm1, %v2428_v1 }
0x1e0f   :  { %2079 = vmatprep.subr.bf16.mxu1 %v2428_v1 }
0x1e12   :  { %2080 = vmatpush3.bf16.msra.mxu1 %v2689_v21 }
0x1e13   :  { %2093 = vmatprep.subr.bf16.mxu1 %v2428_v1 }
0x1ecd   :  { %v1394_v8 = vpop.f32.mrf.mxu1 }
0x1ece   :  { %v1400_v10 = vadd.f32 %v1394_v8, %v1059_v7 }
0x1ecf   :  { %v2067_v13 = vpop.f32.mrf.mxu1 }
0x1ed0   :  { %2217 = vtanh.f32 %v1400_v10  ;;  %v1879_v16 = vmul.f32 -1.442695, %v1400_v10 }
0x1ed1   :  { %v1397_v15 = vpop.f32.mrf.mxu1 }
0x1ed2   :  { %2219 = vpow2.f32 %v1879_v16 }
0x1ed3   :  { %v2068_v12 = vpop.f32.mrf.mxu1 }
0x1edd   :  { %v2218_v4 = vpop.eup %2217 }
0x1ede   :  { %1410 = vrot.lane.b32.xlu0 %v2218_v4, %s2431_s5 }
0x1edf   :  { %v2220_v17 = vpop.eup %2219 }
0x1ee0   :  { %v1404_v18 = vadd.f32 1.0, %v2220_v17  ;;  %v1091_v17 = vstv %s1864_s23 }
0x1ee2   :  { %2221 = vrcp.f32 %v1404_v18  ;;  %v1092_v18 = vmul.f32 %v2765_v31, %v1091_v17 }
0x1eef   :  { %v2222_v58 = vpop.eup %2221 }
0x1ef0   :  { %v1408_v32 = vmul.f32 %v2222_v58, %v1345_v55 }
0x1f50   :  { %v1411_v19 = vpop.permute.xlu0 %1410 }
0x1f51   :  { %v1413_v20 = vmul.f32 %v2222_v58, %v1411_v19 }
0x1f53   :  { %1415 = vrot.lane.b32.xlu1 %v1413_v20, %s2431_s5 }
0x1fc5   :  { %v1416_v11 = vpop.permute.xlu1 %1415 }
0x1fc6   :  { %v1418_v61 = vadd.f32 %v1416_v11, %v1408_v32 }
0x1fc8   :  { %2223 = vtanh.f32 %v1418_v61 }
0x1fd5   :  { %v2224_v2 = vpop.eup %2223 }
0x1fd6   :  { %1421 = vrot.lane.b32.xlu0 %v2224_v2, %s2431_s5 }
0x2048   :  { %v1422_v23 = vpop.permute.xlu0 %1421 }
0x2049   :  { %v1424_v14 = vmul.f32 %v2222_v58, %v1422_v23  ;;  %v1866_v58 = vld [vmem:[%s2862_s6 + $0x6] ss:$0 sm:$0xff] }
0x204a   :  { %v1101_v19 = vadd.f32 %v1866_v58, %v1092_v18 }
0x204b   :  { %v1426_v54 = vpack.c.bf16 %v1424_v14, %v1424_v14 }
0x204d   :  { %1428 = vrot.lane.b32.xlu1 %v1426_v54, %s2418_s16 }
0x20bf   :  { %v1429_v48 = vpop.permute.xlu1 %1428 }
0x20c0   :  { %2074 = vmatmul.mubr.msk.bf16.vlgmr.msra.gmra.mxu0 %vm259_vm2, %v1429_v48 }
0x20c1   :  { %2086 = vmatpush3.bf16.msra.mxu0 %v2686_v26  ;;  %2089 = vmatprep.mubr.msk.bf16.mxu0 %vm2429_vm1, %v2428_v1 }
0x20c2   :  { %2087 = vmatprep.subr.bf16.mxu0 %v2428_v1 }
0x20c5   :  { %2088 = vmatpush3.bf16.msra.mxu0 %v2689_v21 }
0x20c6   :  { %2101 = vmatprep.subr.mxu0 %v2428_v1 }
0x2180   :  { %v1467_v5 = vpop.f32.mrf.mxu0 }
0x2181   :  { %v1473_v33 = vadd.f32 %v1467_v5, %v1073_v27 }
0x2182   :  { %v2075_v28 = vpop.f32.mrf.mxu0 }
0x2183   :  { %2225 = vtanh.f32 %v1473_v33  ;;  %v1881_v38 = vmul.f32 -1.442695, %v1473_v33 }
0x2184   :  { %v1470_v30 = vpop.f32.mrf.mxu0 }
0x2185   :  { %2227 = vpow2.f32 %v1881_v38 }
0x2186   :  { %v2076_v22 = vpop.f32.mrf.mxu0 }
0x2190   :  { %v2226_v36 = vpop.eup %2225 }
0x2191   :  { %1483 = vrot.lane.b32.xlu0 %v2226_v36, %s2431_s5  ;;  %v1105_v36 = vstv %s1867_s25 }
0x2192   :  { %v2228_v39 = vpop.eup %2227  ;;  %v1106_v38 = vmul.f32 %v2769_v37, %v1105_v36 }
0x2193   :  { %v1477_v41 = vadd.f32 1.0, %v2228_v39  ;;  %v1869_v39 = vld [vmem:[%s2862_s6 + $0x7] ss:$0 sm:$0xff] }
0x2195   :  { %2229 = vrcp.f32 %v1477_v41  ;;  %v1115_v41 = vadd.f32 %v1869_v39, %v1106_v38 }
0x21a2   :  { %v2230_v34 = vpop.eup %2229 }
0x21a3   :  { %v1481_v35 = vmul.f32 %v2230_v34, %v1418_v61 }
0x2203   :  { %v1484_v42 = vpop.permute.xlu0 %1483 }
0x2204   :  { %v1486_v43 = vmul.f32 %v2230_v34, %v1484_v42 }
0x2206   :  { %1488 = vrot.lane.b32.xlu1 %v1486_v43, %s2431_s5 }
0x2278   :  { %v1489_v44 = vpop.permute.xlu1 %1488 }
0x2279   :  { %v1491_v45 = vadd.f32 %v1489_v44, %v1481_v35 }
0x227b   :  { %2231 = vtanh.f32 %v1491_v45 }
0x2288   :  { %v2232_v46 = vpop.eup %2231 }
0x2289   :  { %1494 = vrot.lane.b32.xlu0 %v2232_v46, %s2431_s5 }
0x22fb   :  { %v1495_v47 = vpop.permute.xlu0 %1494 }
0x22fc   :  { %v1497_v49 = vmul.f32 %v2230_v34, %v1495_v47 }
0x22fe   :  { %v1499_v29 = vpack.c.bf16 %v1497_v49, %v1497_v49 }
0x2300   :  { %1501 = vrot.lane.b32.xlu1 %v1499_v29, %s2418_s16 }
0x2372   :  { %v1502_v0 = vpop.permute.xlu1 %1501 }
0x2373   :  { %2082 = vmatmul.mubr.msk.bf16.vlgmr.msra.gmra.mxu1 %vm259_vm2, %v1502_v0 }
0x2374   :  { %2094 = vmatpush3.bf16.msra.mxu1 %v2686_v26  ;;  %2097 = vmatprep.mubr.msk.bf16.mxu1 %vm2429_vm1, %v2428_v1 }
0x2375   :  { %2095 = vmatprep.subr.bf16.mxu1 %v2428_v1 }
0x2378   :  { %2096 = vmatpush3.bf16.msra.mxu1 %v2689_v21 }
0x2433   :  { %v1540_v55 = vpop.f32.mrf.mxu1 }
0x2434   :  { %v1546_v56 = vadd.f32 %v1540_v55, %v1087_v53 }
0x2435   :  { %v2083_v57 = vpop.f32.mrf.mxu1 }
0x2436   :  { %2233 = vtanh.f32 %v1546_v56  ;;  %v1883_v62 = vmul.f32 -1.442695, %v1546_v56 }
0x2437   :  { %v1543_v26 = vpop.f32.mrf.mxu1 }
0x2438   :  { %2235 = vpow2.f32 %v1883_v62  ;;  %v1717_v26 = vld [vmem:[%s2864_s8] sm:$0xff] }
0x2439   :  { %v2084_v59 = vpop.f32.mrf.mxu1 }
0x243a   :  { %v1719_v59 = vstv %s2865_s9 }
0x2443   :  { %v2234_v60 = vpop.eup %2233 }
0x2444   :  { %1556 = vrot.lane.b32.xlu0 %v2234_v60, %s2431_s5 }
0x2445   :  { %v2236_v21 = vpop.eup %2235 }
0x2446   :  { %v1550_v63 = vadd.f32 1.0, %v2236_v21 }
0x2448   :  { %2237 = vrcp.f32 %v1550_v63 }
0x2455   :  { %v2238_v40 = vpop.eup %2237 }
0x2456   :  { %v1554_v7 = vmul.f32 %v2238_v40, %v1491_v45 }
0x24b6   :  { %v1557_v6 = vpop.permute.xlu0 %1556 }
0x24b7   :  { %v1559_v3 = vmul.f32 %v2238_v40, %v1557_v6 }
0x24b9   :  { %1561 = vrot.lane.b32.xlu1 %v1559_v3, %s2431_s5 }
0x252b   :  { %v1562_v8 = vpop.permute.xlu1 %1561 }
0x252c   :  { %v1564_v10 = vadd.f32 %v1562_v8, %v1554_v7 }
0x252e   :  { %2239 = vtanh.f32 %v1564_v10 }
0x253b   :  { %v2240_v13 = vpop.eup %2239 }
0x253c   :  { %1567 = vrot.lane.b32.xlu0 %v2240_v13, %s2431_s5 }
0x25ae   :  { %v1568_v15 = vpop.permute.xlu0 %1567 }
0x25af   :  { %v1570_v12 = vmul.f32 %v2238_v40, %v1568_v15 }
0x25b1   :  { %v1572_v4 = vpack.c.bf16 %v1570_v12, %v1570_v12 }
0x25b3   :  { %1574 = vrot.lane.b32.xlu1 %v1572_v4, %s2418_s16 }
0x2625   :  { %v1575_v16 = vpop.permute.xlu1 %1574 }
0x2626   :  { %2090 = vmatmul.mubr.msk.bf16.vlgmr.msra.gmra.mxu0 %vm259_vm2, %v1575_v16 }
0x2627   :  { %2103 = vmatprep.mubr.msk.f32.mxu0 %vm2429_vm1, %v2428_v1 }
0x26e6   :  { %v1613_v20 = vpop.f32.mrf.mxu0 }
0x26e7   :  { %v1619_v32 = vadd.f32 %v1613_v20, %v1101_v19 }
0x26e8   :  { %v2091_v11 = vpop.f32.mrf.mxu0 }
0x26e9   :  { %2241 = vtanh.f32 %v1619_v32  ;;  %v1885_v14 = vmul.f32 -1.442695, %v1619_v32 }
0x26ea   :  { %v1616_v61 = vpop.f32.mrf.mxu0 }
0x26eb   :  { %2243 = vpow2.f32 %v1885_v14 }
0x26ec   :  { %v2092_v2 = vpop.f32.mrf.mxu0 }
0x26f6   :  { %v2242_v23 = vpop.eup %2241 }
0x26f7   :  { %1629 = vrot.lane.b32.xlu0 %v2242_v23, %s2431_s5 }
0x26f8   :  { %v2244_v1 = vpop.eup %2243 }
0x26f9   :  { %v1623_v54 = vadd.f32 1.0, %v2244_v1 }
0x26fb   :  { %2245 = vrcp.f32 %v1623_v54 }
0x2708   :  { %v2246_v31 = vpop.eup %2245 }
0x2709   :  { %v1627_v9 = vmul.f32 %v2246_v31, %v1564_v10 }
0x2769   :  { %v1630_v48 = vpop.permute.xlu0 %1629 }
0x276a   :  { %v1632_v24 = vmul.f32 %v2246_v31, %v1630_v48 }
0x276c   :  { %1634 = vrot.lane.b32.xlu1 %v1632_v24, %s2431_s5 }
0x27de   :  { %v1635_v25 = vpop.permute.xlu1 %1634 }
0x27df   :  { %v1637_v27 = vadd.f32 %v1635_v25, %v1627_v9 }
0x27e1   :  { %2247 = vtanh.f32 %v1637_v27 }
0x27ee   :  { %v2248_v5 = vpop.eup %2247 }
0x27ef   :  { %1640 = vrot.lane.b32.xlu0 %v2248_v5, %s2431_s5 }
0x2861   :  { %v1641_v33 = vpop.permute.xlu0 %1640 }
0x2862   :  { %v1643_v28 = vmul.f32 %v2246_v31, %v1641_v33 }
0x2864   :  { %v1645_v30 = vpack.c.bf16 %v1643_v28, %v1643_v28 }
0x2866   :  { %1647 = vrot.lane.b32.xlu1 %v1645_v30, %s2418_s16 }
0x28d8   :  { %v1648_v22 = vpop.permute.xlu1 %1647 }
0x28d9   :  { %2098 = vmatmul.mubr.msk.bf16.vlgmr.msra.gmra.mxu1 %vm259_vm2, %v1648_v22 }
0x2999   :  { %v1686_v34 = vpop.f32.mrf.mxu1 }
0x299a   :  { %v1692_v42 = vadd.f32 %v1686_v34, %v1115_v41 }
0x299b   :  { %v2099_v43 = vpop.f32.mrf.mxu1 }
0x299c   :  { %2249 = vtanh.f32 %v1692_v42  ;;  %v1887_v46 = vmul.f32 -1.442695, %v1692_v42 }
0x299d   :  { %v1689_v35 = vpop.f32.mrf.mxu1 }
0x299e   :  { %2251 = vpow2.f32 %v1887_v46 }
0x299f   :  { %v2100_v44 = vpop.f32.mrf.mxu1 }
0x29a9   :  { %v2250_v45 = vpop.eup %2249 }
0x29aa   :  { %1702 = vrot.lane.b32.xlu0 %v2250_v45, %s2431_s5 }
0x29ab   :  { %v2252_v47 = vpop.eup %2251 }
0x29ac   :  { %v1696_v49 = vadd.f32 1.0, %v2252_v47 }
0x29ae   :  { %2253 = vrcp.f32 %v1696_v49 }
0x29bb   :  { %v2254_v37 = vpop.eup %2253 }
0x29bc   :  { %v1700_v50 = vmul.f32 %v2254_v37, %v1637_v27 }
0x2a1c   :  { %v1703_v29 = vpop.permute.xlu0 %1702 }
0x2a1d   :  { %v1705_v0 = vmul.f32 %v2254_v37, %v1703_v29 }
0x2a1f   :  { %1707 = vrot.lane.b32.xlu1 %v1705_v0, %s2431_s5 }
0x2a91   :  { %v1708_v51 = vpop.permute.xlu1 %1707 }
0x2a92   :  { %v1710_v52 = vadd.f32 %v1708_v51, %v1700_v50 }
0x2a94   :  { %2255 = vtanh.f32 %v1710_v52 }
0x2aa1   :  { %v2256_v53 = vpop.eup %2255 }
0x2aa2   :  { %1713 = vrot.lane.b32.xlu0 %v2256_v53, %s2431_s5 }
0x2b14   :  { %v1714_v55 = vpop.permute.xlu0 %1713 }
0x2b15   :  { %v1716_v56 = vmul.f32 %v2254_v37, %v1714_v55 }
0x2b17   :  { %1721 = vrot.lane.b32.xlu1 %v1716_v56, %s2418_s16  ;;  %s2385_s16 = scalar_lea.vmem %s1807_s1, 128 }
0x2b18   :  { %p2386_p2 = scmp.ne.s32.totalorder %s1807_s1, %s2385_s16  ;;  %p2391_p4 = scmp.lt.s32.totalorder %s2385_s16, %s2385_s16 }
0x2b1a   :  { %p2392_p5 = por %p2391_p4, %p2390_p3 }
0x2b1c   :  { %p2393_p6 = pnand %p2392_p5, %p2386_p2 }
0x2b89   :  { %v1722_v57 = vpop.permute.xlu1 %1721 }
0x2b8a   :  { %2102 = vmatpush3.xpose.msk.msra.mxu0 %vm259_vm2, %v1722_v57 }
0x2b8d   :  { %2104 = vmatmul.mubr.msk.f32.vlgmr.msra.gmra.mxu0 %vm259_vm2, %v1717_v26 }
0x2c4d   :  { %v1794_v60 = vpop.f32.mrf.mxu0 }
0x2c4e   :  { %v1795_v62 = vadd.f32 %v1794_v60, %v1719_v59 }
0x2c4f   :  { %v2105_v21 = vpop.f32.mrf.mxu0 }
0x2c50   :  { %1799 = vst.msk [vmem:[#allocation18] sm:$0xff] %vm1798_vm3, %v1795_v62 }
0x2c51   :  { %2396 = shalt.err (!%p2393_p6)
}
0x2c52   :  { %1809 = dma.vmem_to_hbm [thread:$0]  %s1807_s1, 128, %s2866_s10, [#allocation7]  }
0x2c53   :  { %2415 = dma.done.wait [#allocation7], 128  }
0x2c54   :  { %2416 = vsyncadd [#allocation7], 4294967168 }
0x2c55   :  { %1813 = vsyncpa [#allocation6], 1 }
0x2c56   :  { %1814 = vsyncpa [#allocation10], 1 }
0x2c57   :  { %1815 = vsyncpa [#allocation13], 1 }
0x2c58   :  { %1816 = vsyncpa [#allocation16], 1 }
0x2c59   :  { %1817 = vsyncpa [#allocation7], 1 }
0x2c5a   :  { %1818 = vsyncpa [#allocation8], 1 }

</bundles_post_ra>
